<compile_context>
chip_gen: v7x
topology: tpu7x:2x2x1
jax: 0.10.0
libtpu: 0.0.40
codegen_flags: <defaults>
</compile_context>

<pallas_src>
import jax
import jax.numpy as jnp
from jax.experimental import pallas as pl
from jax.experimental.pallas import tpu as pltpu

# Padded (lane-aligned) sizes.
_H1P = 384   # fc1 out: 300 -> 384
_H2P = 128   # fc2 out: 100 -> 128
_CP = 128    # classes: 10 -> 128
_NEG = -1e30  # bias for padded class lanes (exp underflows to exactly 0)


def _round_up(v, m):
    return ((v + m - 1) // m) * m


def _lenet_kernel(x_ref, w1_ref, b1_ref, w2_ref, b2_ref, w3_ref, b3_ref, o_ref):
    # x_ref:  (bm, 784)          w1_ref: (784, 384)   b1_ref: (1, 384)
    # w2_ref: (384, 128)         b2_ref: (1, 128)
    # w3_ref: (128, 128)         b3_ref: (1, 128)     o_ref:  (bm, 128)
    x = x_ref[...]

    h1 = jnp.dot(x, w1_ref[...], preferred_element_type=jnp.float32) + b1_ref[...]
    h1 = jnp.maximum(h1, 0.0).astype(w2_ref.dtype)   # padded units stay 0

    h2 = jnp.dot(h1, w2_ref[...], preferred_element_type=jnp.float32) + b2_ref[...]
    h2 = jnp.maximum(h2, 0.0).astype(w3_ref.dtype)   # padded units stay 0

    logits = jnp.dot(h2, w3_ref[...], preferred_element_type=jnp.float32) + b3_ref[...]

    # Numerically stable log_softmax over the 128-lane class dim; the 118
    # padded lanes carry a -1e30 bias -> exp()==0, so the normalizer only
    # sees the 10 real classes.
    m = jnp.max(logits, axis=-1, keepdims=True)
    shifted = logits - m
    lse = jnp.log(jnp.sum(jnp.exp(shifted), axis=-1, keepdims=True))
    o_ref[...] = (shifted - lse).astype(o_ref.dtype)


def prepare_lenet_params(w1, b1, w2, b2, w3, b3, *, compute_dtype=jnp.float32):
    """Transpose PyTorch-layout (out, in) weights to (in, out) and pad to
    lane-aligned sizes.  Call ONCE and reuse across forward calls."""
    w1 = jnp.asarray(w1, jnp.float32)   # (300, 784)
    w2 = jnp.asarray(w2, jnp.float32)   # (100, 300)
    w3 = jnp.asarray(w3, jnp.float32)   # (10, 100)

    w1t = jnp.zeros((784, _H1P), jnp.float32).at[:, :300].set(w1.T)
    b1r = jnp.zeros((1, _H1P), jnp.float32).at[:, :300].set(
        jnp.asarray(b1, jnp.float32).reshape(1, -1))

    w2t = jnp.zeros((_H1P, _H2P), jnp.float32).at[:300, :100].set(w2.T)
    b2r = jnp.zeros((1, _H2P), jnp.float32).at[:, :100].set(
        jnp.asarray(b2, jnp.float32).reshape(1, -1))

    w3t = jnp.zeros((_H2P, _CP), jnp.float32).at[:100, :10].set(w3.T)
    b3r = jnp.full((1, _CP), _NEG, jnp.float32).at[:, :10].set(
        jnp.asarray(b3, jnp.float32).reshape(1, -1))

    # Weights in the MXU compute dtype; biases stay f32 (added to f32 accum).
    return (w1t.astype(compute_dtype), b1r,
            w2t.astype(compute_dtype), b2r,
            w3t.astype(compute_dtype), b3r)


def lenet_300_100_apply(x, params, *, block_b=1024):
    """Forward pass given pre-prepared params (see prepare_lenet_params)."""
    w1t, b1r, w2t, b2r, w3t, b3r = params
    compute_dtype = w1t.dtype

    B = x.shape[0]
    xf = x.reshape(B, -1).astype(compute_dtype)        # x.view(-1, 784)
    assert xf.shape[1] == 784, xf.shape

    # Batch tile size:
    #  - B <= 8: one block equal to the array (always layout-legal).
    #  - else:   >= 2 tiles (feeds both v7x TensorCores via the "parallel"
    #            batch axis), capped at block_b; ragged last tile is handled
    #            by Pallas masked writeback, so no input copy via jnp.pad.
    if B <= 8:
        bm = B
    else:
        bm = min(block_b, _round_up(pl.cdiv(B, 2), 8))
    grid = (pl.cdiv(B, bm),)

    # NOTE: weight/bias BlockSpecs use a constant block index, so they are
    # DMA'd into VMEM once and reused across every grid step.
    out = pl.pallas_call(
        _lenet_kernel,
        out_shape=jax.ShapeDtypeStruct((B, _CP), jnp.float32),
        grid_spec=pltpu.PrefetchScalarGridSpec(
            num_scalar_prefetch=0,
            grid=grid,
            in_specs=[
                pl.BlockSpec((bm, 784), lambda i: (i, 0)),      # batch tile
                pl.BlockSpec((784, _H1P), lambda i: (0, 0)),    # fc1 weight
                pl.BlockSpec((1, _H1P), lambda i: (0, 0)),      # fc1 bias
                pl.BlockSpec((_H1P, _H2P), lambda i: (0, 0)),   # fc2 weight
                pl.BlockSpec((1, _H2P), lambda i: (0, 0)),      # fc2 bias
                pl.BlockSpec((_H2P, _CP), lambda i: (0, 0)),    # fc3 weight
                pl.BlockSpec((1, _CP), lambda i: (0, 0)),       # fc3 bias
            ],
            out_specs=pl.BlockSpec((bm, _CP), lambda i: (i, 0)),
        ),
        compiler_params=pltpu.CompilerParams(
            dimension_semantics=("parallel",),
            # Large tiles on v5e need more than its 16 MiB scoped default;
            # 32 MiB is within every generation's physical VMEM.
            vmem_limit_bytes=32 * 1024 * 1024,
        ),
    )(xf, w1t, b1r, w2t, b2r, w3t, b3r)

    return out[:, :10]                                   # drop padded classes


def lenet_300_100(x, w1, b1, w2, b2, w3, b3, *, block_b=1024,
                  compute_dtype=jnp.float32):
    """Convenience wrapper: PyTorch-layout weights in, log-probs out."""
    params = prepare_lenet_params(w1, b1, w2, b2, w3, b3,
                                  compute_dtype=compute_dtype)
    return lenet_300_100_apply(x, params, block_b=block_b)


def _reference(x, w1, b1, w2, b2, w3, b3):
    xf = x.reshape(x.shape[0], -1).astype(jnp.float32)
    h1 = jax.nn.relu(xf @ w1.T + b1)
    h2 = jax.nn.relu(h1 @ w2.T + b2)
    logits = h2 @ w3.T + b3
    return jax.nn.log_softmax(logits, axis=1)


if __name__ == "__main__":
    key = jax.random.PRNGKey(0)
    kx, k1, k2, k3, kb1, kb2, kb3 = jax.random.split(key, 7)

    # Small MNIST-like input: batch=2, 1x28x28 images (flattened to 784 inside).
    x = jax.random.normal(kx, (2, 1, 28, 28), dtype=jnp.float32)

    # Weights in PyTorch nn.Linear layout: (out_features, in_features).
    w1 = jax.random.normal(k1, (300, 784), dtype=jnp.float32) * (1.0 / 28.0)
    b1 = jax.random.normal(kb1, (300,), dtype=jnp.float32) * 0.01
    w2 = jax.random.normal(k2, (100, 300), dtype=jnp.float32) * (1.0 / 300.0) ** 0.5
    b2 = jax.random.normal(kb2, (100,), dtype=jnp.float32) * 0.1
    w3 = jax.random.normal(k3, (10, 100), dtype=jnp.float32) * 0.1
    b3 = jax.random.normal(kb3, (10,), dtype=jnp.float32) * 0.01

    # Prepare (transpose + pad) the params once, outside the hot path.
    params_f32 = prepare_lenet_params(w1, b1, w2, b2, w3, b3)

    # --- f32 path, batch=2 (single tile) ---
    y = jax.block_until_ready(lenet_300_100_apply(x, params_f32))
    y_ref = _reference(x, w1, b1, w2, b2, w3, b3)
    assert y.shape == (2, 10), y.shape
    assert jnp.allclose(y, y_ref, atol=1e-4, rtol=1e-4), (
        float(jnp.max(jnp.abs(y - y_ref))))

    # --- f32 path, batch=20: two grid steps with a ragged last tile
    #     (exercises the no-wrapper-pad masked-writeback path) ---
    xb = jax.random.normal(kx, (20, 784), dtype=jnp.float32)
    yb = jax.block_until_ready(lenet_300_100_apply(xb, params_f32))
    yb_ref = _reference(xb, w1, b1, w2, b2, w3, b3)
    assert yb.shape == (20, 10), yb.shape
    assert jnp.allclose(yb, yb_ref, atol=1e-4, rtol=1e-4), (
        float(jnp.max(jnp.abs(yb - yb_ref))))

    # --- optional bf16 compute path (MXU-native; f32 accumulation) ---
    params_bf16 = prepare_lenet_params(w1, b1, w2, b2, w3, b3,
                                       compute_dtype=jnp.bfloat16)
    yh = jax.block_until_ready(lenet_300_100_apply(x, params_bf16))
    assert yh.shape == (2, 10), yh.shape
    assert jnp.allclose(yh, y_ref, atol=8e-2, rtol=8e-2), (
        float(jnp.max(jnp.abs(yh - y_ref))))

    print("KERNEL_OK")
</pallas_src>

<mosaic_0001>
module attributes {stable_mosaic.version = 11 : i64} {
  func.func @_lenet_kernel(%arg0: i32, %arg1: memref<2x784xf32, #tpu.memory_space<vmem>>, %arg2: memref<784x384xf32, #tpu.memory_space<vmem>>, %arg3: memref<1x384xf32, #tpu.memory_space<vmem>>, %arg4: memref<384x128xf32, #tpu.memory_space<vmem>>, %arg5: memref<1x128xf32, #tpu.memory_space<vmem>>, %arg6: memref<128x128xf32, #tpu.memory_space<vmem>>, %arg7: memref<1x128xf32, #tpu.memory_space<vmem>>, %arg8: memref<2x128xf32, #tpu.memory_space<vmem>>) attributes {dimension_semantics = [#tpu.dimension_semantics<parallel>], iteration_bounds = array<i64: 1>, scalar_prefetch = 0 : i64, scratch_operands = 0 : i64, tpu.core_type = #tpu.core_type<tc>, window_params = [{transform_indices = @transform_0, window_bounds = array<i64: 2, 784>}, {pipeline_mode = #tpu.pipeline_mode<synchronous>, transform_indices = @transform_1, window_bounds = array<i64: 784, 384>}, {pipeline_mode = #tpu.pipeline_mode<synchronous>, transform_indices = @transform_2, window_bounds = array<i64: 1, 384>}, {pipeline_mode = #tpu.pipeline_mode<synchronous>, transform_indices = @transform_3, window_bounds = array<i64: 384, 128>}, {pipeline_mode = #tpu.pipeline_mode<synchronous>, transform_indices = @transform_4, window_bounds = array<i64: 1, 128>}, {pipeline_mode = #tpu.pipeline_mode<synchronous>, transform_indices = @transform_5, window_bounds = array<i64: 128, 128>}, {pipeline_mode = #tpu.pipeline_mode<synchronous>, transform_indices = @transform_6, window_bounds = array<i64: 1, 128>}, {transform_indices = @transform_7, window_bounds = array<i64: 2, 128>}]} {
    %c0 = arith.constant 0 : index
    %c0_0 = arith.constant 0 : index
    %0 = vector.load %arg1[%c0, %c0_0] : memref<2x784xf32, #tpu.memory_space<vmem>>, vector<2x784xf32>
    %c0_1 = arith.constant 0 : index
    %c0_2 = arith.constant 0 : index
    %1 = vector.load %arg2[%c0_1, %c0_2] : memref<784x384xf32, #tpu.memory_space<vmem>>, vector<784x384xf32>
    %cst = arith.constant dense<0.000000e+00> : vector<2x384xf32>
    %2 = tpu.matmul %0, %1, %cst {dimension_numbers = #tpu.dot_dimension_numbers<[1], [0], [0], [1], [0, 0, 1, 1], [], []>} : vector<2x784xf32>, vector<784x384xf32>, vector<2x384xf32> -> vector<2x384xf32>
    %c0_3 = arith.constant 0 : index
    %c0_4 = arith.constant 0 : index
    %3 = vector.load %arg3[%c0_3, %c0_4] : memref<1x384xf32, #tpu.memory_space<vmem>>, vector<1x384xf32>
    %4 = vector.broadcast %3 : vector<1x384xf32> to vector<2x384xf32>
    %5 = arith.addf %2, %4 : vector<2x384xf32>
    %cst_5 = arith.constant 0.000000e+00 : f32
    %6 = vector.broadcast %cst_5 : f32 to vector<2x384xf32>
    %7 = arith.maximumf %5, %6 : vector<2x384xf32>
    %c0_6 = arith.constant 0 : index
    %c0_7 = arith.constant 0 : index
    %8 = vector.load %arg4[%c0_6, %c0_7] : memref<384x128xf32, #tpu.memory_space<vmem>>, vector<384x128xf32>
    %cst_8 = arith.constant dense<0.000000e+00> : vector<2x128xf32>
    %9 = tpu.matmul %7, %8, %cst_8 {dimension_numbers = #tpu.dot_dimension_numbers<[1], [0], [0], [1], [0, 0, 1, 1], [], []>} : vector<2x384xf32>, vector<384x128xf32>, vector<2x128xf32> -> vector<2x128xf32>
    %c0_9 = arith.constant 0 : index
    %c0_10 = arith.constant 0 : index
    %10 = vector.load %arg5[%c0_9, %c0_10] : memref<1x128xf32, #tpu.memory_space<vmem>>, vector<1x128xf32>
    %11 = vector.broadcast %10 : vector<1x128xf32> to vector<2x128xf32>
    %12 = arith.addf %9, %11 : vector<2x128xf32>
    %cst_11 = arith.constant 0.000000e+00 : f32
    %13 = vector.broadcast %cst_11 : f32 to vector<2x128xf32>
    %14 = arith.maximumf %12, %13 : vector<2x128xf32>
    %c0_12 = arith.constant 0 : index
    %c0_13 = arith.constant 0 : index
    %15 = vector.load %arg6[%c0_12, %c0_13] : memref<128x128xf32, #tpu.memory_space<vmem>>, vector<128x128xf32>
    %cst_14 = arith.constant dense<0.000000e+00> : vector<2x128xf32>
    %16 = tpu.matmul %14, %15, %cst_14 {dimension_numbers = #tpu.dot_dimension_numbers<[1], [0], [0], [1], [0, 0, 1, 1], [], []>} : vector<2x128xf32>, vector<128x128xf32>, vector<2x128xf32> -> vector<2x128xf32>
    %c0_15 = arith.constant 0 : index
    %c0_16 = arith.constant 0 : index
    %17 = vector.load %arg7[%c0_15, %c0_16] : memref<1x128xf32, #tpu.memory_space<vmem>>, vector<1x128xf32>
    %18 = vector.broadcast %17 : vector<1x128xf32> to vector<2x128xf32>
    %19 = arith.addf %16, %18 : vector<2x128xf32>
    %cst_17 = arith.constant dense<0xFF800000> : vector<2xf32>
    %20 = vector.multi_reduction <maximumf>, %19, %cst_17 [1] : vector<2x128xf32> to vector<2xf32>
    %21 = vector.shape_cast %20 : vector<2xf32> to vector<2x1xf32>
    %22 = vector.broadcast %21 : vector<2x1xf32> to vector<2x128xf32>
    %23 = arith.subf %19, %22 : vector<2x128xf32>
    %24 = math.exp %23 : vector<2x128xf32>
    %cst_18 = arith.constant dense<0.000000e+00> : vector<2xf32>
    %25 = vector.multi_reduction <add>, %24, %cst_18 [1] : vector<2x128xf32> to vector<2xf32>
    %26 = vector.shape_cast %25 : vector<2xf32> to vector<2x1xf32>
    %27 = math.log %26 : vector<2x1xf32>
    %28 = vector.broadcast %27 : vector<2x1xf32> to vector<2x128xf32>
    %29 = arith.subf %23, %28 : vector<2x128xf32>
    %c0_19 = arith.constant 0 : index
    %c0_20 = arith.constant 0 : index
    %30 = vector.load %arg8[%c0_19, %c0_20] : memref<2x128xf32, #tpu.memory_space<vmem>>, vector<2x128xf32>
    tpu.vector_store %arg8[%c0_19, %c0_20], %29 {strides = array<i32>} : memref<2x128xf32, #tpu.memory_space<vmem>>, vector<2x128xf32>,
    return
  }
  func.func @transform_0(%arg0: i32) -> (i32, i32) {
    %c0_i32 = arith.constant 0 : i32
    %c0_i32_0 = arith.constant 0 : i32
    return %arg0, %c0_i32 : i32, i32
  }
  func.func @transform_1(%arg0: i32) -> (i32, i32) {
    %c0_i32 = arith.constant 0 : i32
    %c0_i32_0 = arith.constant 0 : i32
    %c0_i32_1 = arith.constant 0 : i32
    return %c0_i32, %c0_i32_0 : i32, i32
  }
  func.func @transform_2(%arg0: i32) -> (i32, i32) {
    %c0_i32 = arith.constant 0 : i32
    %c0_i32_0 = arith.constant 0 : i32
    %c0_i32_1 = arith.constant 0 : i32
    return %c0_i32, %c0_i32_0 : i32, i32
  }
  func.func @transform_3(%arg0: i32) -> (i32, i32) {
    %c0_i32 = arith.constant 0 : i32
    %c0_i32_0 = arith.constant 0 : i32
    %c0_i32_1 = arith.constant 0 : i32
    return %c0_i32, %c0_i32_0 : i32, i32
  }
  func.func @transform_4(%arg0: i32) -> (i32, i32) {
    %c0_i32 = arith.constant 0 : i32
    %c0_i32_0 = arith.constant 0 : i32
    %c0_i32_1 = arith.constant 0 : i32
    return %c0_i32, %c0_i32_0 : i32, i32
  }
  func.func @transform_5(%arg0: i32) -> (i32, i32) {
    %c0_i32 = arith.constant 0 : i32
    %c0_i32_0 = arith.constant 0 : i32
    %c0_i32_1 = arith.constant 0 : i32
    return %c0_i32, %c0_i32_0 : i32, i32
  }
  func.func @transform_6(%arg0: i32) -> (i32, i32) {
    %c0_i32 = arith.constant 0 : i32
    %c0_i32_0 = arith.constant 0 : i32
    %c0_i32_1 = arith.constant 0 : i32
    return %c0_i32, %c0_i32_0 : i32, i32
  }
  func.func @transform_7(%arg0: i32) -> (i32, i32) {
    %c0_i32 = arith.constant 0 : i32
    %c0_i32_0 = arith.constant 0 : i32
    return %arg0, %c0_i32 : i32, i32
  }
}

</mosaic_0001>

<bundles_post_ra>
// kernel: tpu_custom_call.1
= control target key start
LH: loop header
LB: loop body
LE: loop exit
PB: predicated region body
PF: predicated region fallthrough
CT: control target
= control target key end

     0   :  { %12 = vsyncpa [#allocation3], 0  ;;  %s2434_s0 = inlined_call_operand.hbm [shape: f32[2,784], index: 0, kind: input, shape index: {}]   ;;  %s2435_s1 = inlined_call_operand.hbm [shape: f32[784,384], index: 1, kind: input, shape index: {}]   ;;  %s2436_s2 = inlined_call_operand.hbm [shape: f32[1,384], index: 2, kind: input, shape index: {}]   ;;  %s2437_s3 = inlined_call_operand.hbm [shape: f32[384,128], index: 3, kind: input, shape index: {}]   ;;  %s2438_s4 = inlined_call_operand.hbm [shape: f32[1,128], index: 4, kind: input, shape index: {}]   ;;  %s2439_s5 = inlined_call_operand.hbm [shape: f32[128,128], index: 5, kind: input, shape index: {}]   ;;  %s2440_s6 = inlined_call_operand.hbm [shape: f32[1,128], index: 6, kind: input, shape index: {}]   ;;  %s2441_s7 = inlined_call_operand.hbm [shape: f32[2,128], index: 7, kind: output, shape index: {}]  }
   0x1   :  { %13 = vsyncpa [#allocation6], 0 }
   0x2   :  { %14 = vsyncpa [#allocation9], 0 }
   0x3   :  { %15 = vsyncpa [#allocation12], 0 }
   0x4   :  { %16 = vsyncpa [#allocation4], 0  ;;  %s2208_s24 = smov [#allocation5]   ;;  %s2022_s28 = scalar_lea.hbm %s2435_s1, 37632 }
   0x5   :  { %s32_s25 = sshll.u32 %s2208_s24, 4  ;;  %p2023_p0 = scmp.ne.s32.totalorder %s2435_s1, %s2022_s28  ;;  %s33_s25 = int_to_ptr.vmem [resolvable:$true] %s32_s25 }
   0x6   :  { %p2026_p1 = scmp.lt.u32.totalorder %s2022_s28, %s2435_s1 }
   0x8   :  { %p2028_p2 = pnand %p2026_p1, %p2023_p0 }
   0xa   :  { %2031 = shalt.err (!%p2028_p2)
}
   0xb   :  { %s2032_s10 = scalar_lea.vmem %s33_s25, 37632  ;;  %p2037_p4 = scmp.lt.s32.totalorder %s33_s25, %s33_s25 }
   0xc   :  { %p2033_p3 = scmp.ne.s32.totalorder %s33_s25, %s2032_s10  ;;  %p2038_p5 = scmp.lt.s32.totalorder %s2032_s10, %s2032_s10 }
   0xe   :  { %p2039_p6 = por %p2038_p5, %p2037_p4 }
  0x10   :  { %p2040_p7 = pnand %p2039_p6, %p2033_p3 }
  0x12   :  { %2043 = shalt.err (!%p2040_p7)
}
  0x13   :  { %s2209_s11 = smov 384   ;;  %s2210_s12 = smov 24  }
  0x14   :  { %38 = dma.hbm_to_vmem [thread:$0]  %s2435_s1, 37632, %s33_s25, [#allocation6], %s2209_s11, %s2209_s11, %s2210_s12  }
  0x15   :  { %s2211_s15 = smov [#allocation8]   ;;  %s2044_s19 = scalar_lea.hbm %s2437_s3, 6144 }
  0x16   :  { %s54_s16 = sshll.u32 %s2211_s15, 4  ;;  %p2045_p8 = scmp.ne.s32.totalorder %s2437_s3, %s2044_s19  ;;  %s55_s16 = int_to_ptr.vmem [resolvable:$true] %s54_s16 }
  0x17   :  { %p2048_p9 = scmp.lt.u32.totalorder %s2044_s19, %s2437_s3 }
  0x19   :  { %p2050_p10 = pnand %p2048_p9, %p2045_p8 }
  0x1b   :  { %2053 = shalt.err (!%p2050_p10)
}
  0x1c   :  { %s2054_s24 = scalar_lea.vmem %s55_s16, 6144  ;;  %p2059_p12 = scmp.lt.s32.totalorder %s55_s16, %s55_s16 }
  0x1d   :  { %p2055_p11 = scmp.ne.s32.totalorder %s55_s16, %s2054_s24  ;;  %p2060_p13 = scmp.lt.s32.totalorder %s2054_s24, %s2054_s24 }
  0x1f   :  { %p2061_p0 = por %p2060_p13, %p2059_p12 }
  0x21   :  { %p2062_p1 = pnand %p2061_p0, %p2055_p11 }
  0x23   :  { %2065 = shalt.err (!%p2062_p1)
}
  0x24   :  { %s2212_s1 = smov 128   ;;  %s2213_s25 = smov 8  }
  0x25   :  { %60 = dma.hbm_to_vmem [thread:$0]  %s2437_s3, 6144, %s55_s16, [#allocation9], %s2212_s1, %s2212_s1, %s2213_s25  }
  0x26   :  { %s2214_s28 = smov [#allocation11]   ;;  %s2215_s30 = smov [#allocation2]  }
  0x27   :  { %s76_s29 = sshll.u32 %s2214_s28, 4  ;;  %s23_s8 = sshll.u32 %s2215_s30, 4  ;;  %s77_s29 = int_to_ptr.vmem [resolvable:$true] %s76_s29  ;;  %s24_s8 = int_to_ptr.vmem [resolvable:$true] %s23_s8 }
  0x28   :  { %s2066_s11 = scalar_lea.hbm %s2439_s5, 2048 }
  0x29   :  { %p2067_p2 = scmp.ne.s32.totalorder %s2439_s5, %s2066_s11  ;;  %p2070_p3 = scmp.lt.u32.totalorder %s2066_s11, %s2439_s5 }
  0x2b   :  { %p2072_p4 = pnand %p2070_p3, %p2067_p2 }
  0x2d   :  { %2075 = shalt.err (!%p2072_p4)
}
  0x2e   :  { %s2076_s3 = scalar_lea.vmem %s77_s29, 2048  ;;  %p2081_p6 = scmp.lt.s32.totalorder %s77_s29, %s77_s29 }
  0x2f   :  { %p2077_p5 = scmp.ne.s32.totalorder %s77_s29, %s2076_s3  ;;  %p2082_p7 = scmp.lt.s32.totalorder %s2076_s3, %s2076_s3 }
  0x31   :  { %p2083_p8 = por %p2082_p7, %p2081_p6 }
  0x33   :  { %p2084_p9 = pnand %p2083_p8, %p2077_p5 }
  0x35   :  { %2087 = shalt.err (!%p2084_p9)
}
  0x36   :  { %82 = dma.hbm_to_vmem [thread:$0]  %s2439_s5, 2048, %s77_s29, [#allocation12], %s2212_s1, %s2212_s1, %s2213_s25  }
  0x37   :  { %s2088_s20 = scalar_lea.hbm %s2434_s0, 224 }
  0x38   :  { %p2089_p10 = scmp.ne.s32.totalorder %s2434_s0, %s2088_s20  ;;  %p2092_p11 = scmp.lt.u32.totalorder %s2088_s20, %s2434_s0 }
  0x3a   :  { %p2094_p12 = pnand %p2092_p11, %p2089_p10 }
  0x3c   :  { %2097 = shalt.err (!%p2094_p12)
}
  0x3d   :  { %s2098_s26 = scalar_lea.vmem %s24_s8, 224  ;;  %p2103_p0 = scmp.lt.s32.totalorder %s24_s8, %s24_s8 }
  0x3e   :  { %p2099_p13 = scmp.ne.s32.totalorder %s24_s8, %s2098_s26  ;;  %p2104_p1 = scmp.lt.s32.totalorder %s2098_s26, %s2098_s26 }
  0x40   :  { %p2105_p2 = por %p2104_p1, %p2103_p0 }
  0x42   :  { %p2106_p3 = pnand %p2105_p2, %p2099_p13 }
  0x44   :  { %2109 = shalt.err (!%p2106_p3)
}
  0x45   :  { %26 = dma.hbm_to_vmem [thread:$0]  %s2434_s0, 224, %s24_s8, [#allocation3]  }
  0x46   :  { %s2216_s25 = smov [#allocation7]   ;;  %s2217_s28 = smov [#allocation10]  }
  0x47   :  { %s45_s27 = sshll.u32 %s2216_s25, 4  ;;  %s67_s29 = sshll.u32 %s2217_s28, 4  ;;  %s46_s27 = int_to_ptr.vmem [resolvable:$true] %s45_s27  ;;  %s68_s29 = int_to_ptr.vmem [resolvable:$true] %s67_s29 }
  0x48   :  { %s2110_s10 = scalar_lea.hbm %s2436_s2, 48 }
  0x49   :  { %p2111_p4 = scmp.ne.s32.totalorder %s2436_s2, %s2110_s10  ;;  %p2114_p5 = scmp.lt.u32.totalorder %s2110_s10, %s2436_s2 }
  0x4b   :  { %p2116_p6 = pnand %p2114_p5, %p2111_p4 }
  0x4d   :  { %2119 = shalt.err (!%p2116_p6)
}
  0x4e   :  { %s2120_s0 = scalar_lea.vmem %s46_s27, 48  ;;  %s2124_s8 = scalar_lea.vmem %s46_s27, 64 }
  0x4f   :  { %p2121_p7 = scmp.ne.s32.totalorder %s46_s27, %s2120_s0  ;;  %p2125_p8 = scmp.lt.s32.totalorder %s46_s27, %s46_s27 }
  0x50   :  { %p2126_p9 = scmp.lt.s32.totalorder %s2124_s8, %s2120_s0 }
  0x52   :  { %p2127_p10 = por %p2126_p9, %p2125_p8 }
  0x54   :  { %p2128_p11 = pnand %p2127_p10, %p2121_p7 }
  0x56   :  { %2131 = shalt.err (!%p2128_p11)
}
  0x57   :  { %48 = dma.hbm_to_vmem [thread:$0]  %s2436_s2, 48, %s46_s27, [#allocation6]  }
  0x58   :  { %s2132_s18 = scalar_lea.hbm %s2438_s4, 16 }
  0x59   :  { %p2133_p12 = scmp.ne.s32.totalorder %s2438_s4, %s2132_s18  ;;  %p2136_p13 = scmp.lt.u32.totalorder %s2132_s18, %s2438_s4 }
  0x5b   :  { %p2138_p0 = pnand %p2136_p13, %p2133_p12 }
  0x5d   :  { %2141 = shalt.err (!%p2138_p0)
}
  0x5e   :  { %s2142_s23 = scalar_lea.vmem %s68_s29, 16  ;;  %s2146_s24 = scalar_lea.vmem %s68_s29, 32 }
  0x5f   :  { %p2143_p1 = scmp.ne.s32.totalorder %s68_s29, %s2142_s23  ;;  %p2147_p2 = scmp.lt.s32.totalorder %s68_s29, %s68_s29 }
  0x60   :  { %p2148_p3 = scmp.lt.s32.totalorder %s2146_s24, %s2142_s23 }
  0x62   :  { %p2149_p4 = por %p2148_p3, %p2147_p2 }
  0x64   :  { %p2150_p5 = pnand %p2149_p4, %p2143_p1 }
  0x66   :  { %2153 = shalt.err (!%p2150_p5)
}
  0x67   :  { %70 = dma.hbm_to_vmem [thread:$0]  %s2438_s4, 16, %s68_s29, [#allocation9]  }
  0x68   :  { %s2218_s5 = smov [#allocation13]   ;;  %s2154_s28 = scalar_lea.hbm %s2440_s6, 16 }
  0x69   :  { %s89_s1 = sshll.u32 %s2218_s5, 4  ;;  %p2155_p6 = scmp.ne.s32.totalorder %s2440_s6, %s2154_s28  ;;  %s90_s1 = int_to_ptr.vmem [resolvable:$true] %s89_s1 }
  0x6a   :  { %p2158_p7 = scmp.lt.u32.totalorder %s2154_s28, %s2440_s6 }
  0x6c   :  { %p2160_p8 = pnand %p2158_p7, %p2155_p6 }
  0x6e   :  { %2163 = shalt.err (!%p2160_p8)
}
  0x6f   :  { %s2164_s12 = scalar_lea.vmem %s90_s1, 16  ;;  %s2168_s4 = scalar_lea.vmem %s90_s1, 32 }
  0x70   :  { %p2165_p9 = scmp.ne.s32.totalorder %s90_s1, %s2164_s12  ;;  %p2169_p10 = scmp.lt.s32.totalorder %s90_s1, %s90_s1 }
  0x71   :  { %p2170_p11 = scmp.lt.s32.totalorder %s2168_s4, %s2164_s12 }
  0x73   :  { %p2171_p12 = por %p2170_p11, %p2169_p10 }
  0x75   :  { %p2172_p13 = pnand %p2171_p12, %p2165_p9 }
  0x77   :  { %2175 = shalt.err (!%p2172_p13)
}
  0x78   :  { %92 = dma.hbm_to_vmem [thread:$0]  %s2440_s6, 16, %s90_s1, [#allocation12]  }
  0x79   :  { %2198 = dma.done.wait [#allocation3], 224  }
  0x7a   :  { %2199 = vsyncadd [#allocation3], 4294967072 }
  0x7b   :  { %2200 = dma.done.wait [#allocation6], 37680  }
  0x7c   :  { %2201 = vsyncadd [#allocation6], 4294929616 }
  0x7d   :  { %2202 = dma.done.wait [#allocation9], 6160  }
  0x7e   :  { %2203 = vsyncadd [#allocation9], 4294961136 }
  0x7f   :  { %2204 = dma.done.wait [#allocation12], 2064  }
  0x80   :  { %2205 = vsyncadd [#allocation12], 4294965232  ;;  %v117_v0 = vld [vmem:[#allocation5 + $0x8] sm:$0xff]  ;;  %v120_v1 = vld [vmem:[#allocation5 + $0x20] sm:$0xff]  ;;  %v412_v25 = vlaneseq  ;;  %v2219_v26 = vmov 1983009808  }
  0x81   :  { %v116_v2 = vld [vmem:[#allocation5] sm:$0xff]  ;;  %v1617_v3 = vpack.c.bf16 %v120_v1, %v117_v0  ;;  %v119_v4 = vld [vmem:[#allocation5 + $0x18] sm:$0xff]  ;;  %v126_v6 = vld [vmem:[#allocation5 + $0x50] sm:$0xff]  ;;  %v431_v27 = vunpack.c.l.s4 %v2219_v26  ;;  %vm2221_vm0 = vmmov 0   ;;  %vm468_vm1 = vcmask 130048   ;;  %s2223_s6 = smov [#allocation14]  }
  0x82   :  { %v123_v5 = vld [vmem:[#allocation5 + $0x38] sm:$0xff]  ;;  %v1619_v7 = vpack.c.bf16 %v119_v4, %v116_v2  ;;  %v122_v9 = vld [vmem:[#allocation5 + $0x30] sm:$0xff]  ;;  %v125_v10 = vld [vmem:[#allocation5 + $0x48] sm:$0xff]  ;;  %v2348_v34 = vshrl.u32 %v412_v25, 7  ;;  %vm1327_vm2 = vcmask 1041408   ;;  %s1347_s14 = sshll.u32 %s2223_s6, 4  ;;  %s1348_s14 = int_to_ptr.vmem [resolvable:$true] %s1347_s14 }
  0x83   :  { %v1621_v8 = vpack.c.bf16 %v126_v6, %v123_v5  ;;  %v129_v11 = vld [vmem:[#allocation5 + $0x68] sm:$0xff]  ;;  %1618 = vmatprep.subr.bf16.mxu0 %v1617_v3  ;;  %v132_v12 = vld [vmem:[#allocation5 + $0x80] sm:$0xff]  ;;  %v1623_v13 = vpack.c.bf16 %v125_v10, %v122_v9  ;;  %v131_v16 = vld [vmem:[#allocation5 + $0x78] sm:$0xff]  ;;  %v432_v35 = vunpack.c.0.s8 %v431_v27  ;;  %s2176_s0 = scalar_lea.vmem %s1348_s14, 32  ;;  %p2181_p1 = scmp.lt.s32.totalorder %s1348_s14, %s1348_s14 }
  0x84   :  { %1620 = vmatpush1.bf16.msra.mxu0 %v1619_v7  ;;  %v1625_v14 = vpack.c.bf16 %v132_v12, %v129_v11  ;;  %v128_v15 = vld [vmem:[#allocation5 + $0x60] sm:$0xff]  ;;  %v135_v17 = vld [vmem:[#allocation5 + $0x98] sm:$0xff]  ;;  %v138_v18 = vld [vmem:[#allocation5 + $0xb0] sm:$0xff]  ;;  %p2177_p0 = scmp.ne.s32.totalorder %s1348_s14, %s2176_s0  ;;  %p2182_p2 = scmp.lt.s32.totalorder %s2176_s0, %s2176_s0 }
  0x85   :  { %1622 = vmatprep.subr.bf16.mxu0 %v1621_v8  ;;  %v1627_v19 = vpack.c.bf16 %v131_v16, %v128_v15  ;;  %v1629_v20 = vpack.c.bf16 %v138_v18, %v135_v17  ;;  %v134_v21 = vld [vmem:[#allocation5 + $0x90] sm:$0xff]  ;;  %v137_v22 = vld [vmem:[#allocation5 + $0xa8] sm:$0xff]  ;;  %v144_v24 = vld [vmem:[#allocation5 + $0xe0] sm:$0xff]  ;;  %v2351_v42 = vsub.s32 %v432_v35, %v2348_v34 }
  0x86   :  { %v141_v23 = vld [vmem:[#allocation5 + $0xc8] sm:$0xff]  ;;  %v1631_v28 = vpack.c.bf16 %v137_v22, %v134_v21  ;;  %v140_v30 = vld [vmem:[#allocation5 + $0xc0] sm:$0xff]  ;;  %v143_v31 = vld [vmem:[#allocation5 + $0xd8] sm:$0xff]  ;;  %p2183_p3 = por %p2182_p2, %p2181_p1 }
  0x87   :  { %v1633_v29 = vpack.c.bf16 %v144_v24, %v141_v23  ;;  %v147_v32 = vld [vmem:[#allocation5 + $0xf8] sm:$0xff]  ;;  %v150_v33 = vld [vmem:[#allocation5 + $0x110] sm:$0xff]  ;;  %v1635_v36 = vpack.c.bf16 %v143_v31, %v140_v30  ;;  %v149_v39 = vld [vmem:[#allocation5 + $0x108] sm:$0xff] }
  0x88   :  { %1624 = vmatpush1.bf16.msra.mxu0 %v1623_v13  ;;  %v1637_v37 = vpack.c.bf16 %v150_v33, %v147_v32  ;;  %v146_v38 = vld [vmem:[#allocation5 + $0xf0] sm:$0xff]  ;;  %v153_v40 = vld [vmem:[#allocation5 + $0x128] sm:$0xff]  ;;  %v156_v41 = vld [vmem:[#allocation5 + $0x140] sm:$0xff]  ;;  %p2184_p4 = pnand %p2183_p3, %p2177_p0 }
  0x89   :  { %1626 = vmatprep.subr.bf16.mxu0 %v1625_v14  ;;  %v1639_v43 = vpack.c.bf16 %v149_v39, %v146_v38  ;;  %v1641_v44 = vpack.c.bf16 %v156_v41, %v153_v40  ;;  %v152_v45 = vld [vmem:[#allocation5 + $0x120] sm:$0xff]  ;;  %v155_v46 = vld [vmem:[#allocation5 + $0x138] sm:$0xff]  ;;  %v162_v49 = vld [vmem:[#allocation5 + $0x170] sm:$0xff] }
  0x8a   :  { %v2353_v47 = vld [vmem:[#allocation2] sm:$0xff]  ;;  %v1643_v51 = vpack.c.bf16 %v155_v46, %v152_v45  ;;  %v161_v53 = vld [vmem:[#allocation5 + $0x168] sm:$0xff]  ;;  %v168_v57 = vld [vmem:[#allocation5 + $0x1a0] sm:$0xff] }
  0x8b   :  { %v159_v48 = vld [vmem:[#allocation5 + $0x158] sm:$0xff]  ;;  %v2357_v50 = vrot.slane %v2353_v47, %v2351_v42  ;;  %v158_v52 = vld [vmem:[#allocation5 + $0x150] sm:$0xff]  ;;  %v165_v56 = vld [vmem:[#allocation5 + $0x188] sm:$0xff] }
  0x8c   :  { %1628 = vmatpush1.bf16.msra.mxu0 %v1627_v19  ;;  %v1645_v55 = vpack.c.bf16 %v162_v49, %v159_v48  ;;  %v166_v58 = vld [vmem:[#allocation5 + $0x190] sm:$0xff]  ;;  %v169_v59 = vld [vmem:[#allocation5 + $0x1a8] sm:$0xff]  ;;  %v1647_v0 = vpack.c.bf16 %v161_v53, %v158_v52  ;;  %v164_v1 = vld [vmem:[#allocation5 + $0x180] sm:$0xff]  ;;  %v1649_v4 = vpack.c.bf16 %v168_v57, %v165_v56 }
  0x8d   :  { %1630 = vmatprep.subr.bf16.mxu0 %v1629_v20  ;;  %v444_v54 = vcombine.high %v2357_v50, %v2357_v50  ;;  %v118_v60 = vld [vmem:[#allocation5 + $0x10] sm:$0xff]  ;;  %v121_v61 = vld [vmem:[#allocation5 + $0x28] sm:$0xff]  ;;  %v1813_v62 = vpack.c.bf16 %v169_v59, %v166_v58  ;;  %v172_v2 = vld [vmem:[#allocation5 + $0x1c0] sm:$0xff] }
  0x8e   :  { %v1815_v63 = vpack.c.bf16 %v121_v61, %v118_v60  ;;  %v175_v3 = vld [vmem:[#allocation5 + $0x1d8] sm:$0xff]  ;;  %v124_v7 = vld [vmem:[#allocation5 + $0x40] sm:$0xff]  ;;  %v174_v10 = vld [vmem:[#allocation5 + $0x1d0] sm:$0xff] }
  0x8f   :  { %535 = vmatprep.mubr.f32.mxu0 %v444_v54  ;;  %819 = vmatprep.mubr.f32.mxu1 %v444_v54  ;;  %v167_v5 = vld [vmem:[#allocation5 + $0x198] sm:$0xff]  ;;  %v1817_v6 = vpack.c.bf16 %v175_v3, %v172_v2  ;;  %v178_v12 = vld [vmem:[#allocation5 + $0x1f0] sm:$0xff]  ;;  %v181_v13 = vld [vmem:[#allocation5 + $0x208] sm:$0xff] }
  0x90   :  { %1632 = vmatpush1.bf16.msra.mxu0 %v1631_v28  ;;  %1814 = vmatprep.subr.bf16.mxu1 %v1813_v62  ;;  %v127_v8 = vld [vmem:[#allocation5 + $0x58] sm:$0xff]  ;;  %v130_v14 = vld [vmem:[#allocation5 + $0x70] sm:$0xff]  ;;  %v1651_v15 = vpack.c.bf16 %v167_v5, %v164_v1  ;;  %v1821_v16 = vpack.c.bf16 %v181_v13, %v178_v12  ;;  %v133_v17 = vld [vmem:[#allocation5 + $0x88] sm:$0xff] }
  0x91   :  { %1634 = vmatprep.subr.bf16.mxu0 %v1633_v29  ;;  %v171_v9 = vld [vmem:[#allocation5 + $0x1b8] sm:$0xff]  ;;  %1816 = vmatpush3.bf16.msra.mxu1 %v1815_v63  ;;  %v1819_v11 = vpack.c.bf16 %v127_v8, %v124_v7  ;;  %v170_v19 = vld [vmem:[#allocation5 + $0x1b0] sm:$0xff]  ;;  %v173_v20 = vld [vmem:[#allocation5 + $0x1c8] sm:$0xff]  ;;  %v1823_v24 = vpack.c.bf16 %v133_v17, %v130_v14 }
  0x92   :  { %1818 = vmatprep.subr.bf16.mxu1 %v1817_v6  ;;  %v1653_v18 = vpack.c.bf16 %v174_v10, %v171_v9  ;;  %v184_v21 = vld [vmem:[#allocation5 + $0x220] sm:$0xff]  ;;  %v177_v22 = vld [vmem:[#allocation5 + $0x1e8] sm:$0xff]  ;;  %v187_v25 = vld [vmem:[#allocation5 + $0x238] sm:$0xff]  ;;  %v1655_v29 = vpack.c.bf16 %v173_v20, %v170_v19 }
  0x93   :  { %v180_v23 = vld [vmem:[#allocation5 + $0x200] sm:$0xff]  ;;  %v1825_v26 = vpack.c.bf16 %v187_v25, %v184_v21  ;;  %v139_v28 = vld [vmem:[#allocation5 + $0xb8] sm:$0xff]  ;;  %v190_v30 = vld [vmem:[#allocation5 + $0x250] sm:$0xff] }
  0x94   :  { %1636 = vmatpush1.bf16.msra.mxu0 %v1635_v36  ;;  %v136_v27 = vld [vmem:[#allocation5 + $0xa0] sm:$0xff]  ;;  %v193_v31 = vld [vmem:[#allocation5 + $0x268] sm:$0xff]  ;;  %v1657_v32 = vpack.c.bf16 %v180_v23, %v177_v22  ;;  %v179_v35 = vld [vmem:[#allocation5 + $0x1f8] sm:$0xff] }
  0x95   :  { %1638 = vmatprep.subr.bf16.mxu0 %v1637_v37  ;;  %1820 = vmatpush3.bf16.msra.mxu1 %v1819_v11  ;;  %v176_v33 = vld [vmem:[#allocation5 + $0x1e0] sm:$0xff]  ;;  %v183_v36 = vld [vmem:[#allocation5 + $0x218] sm:$0xff]  ;;  %v186_v37 = vld [vmem:[#allocation5 + $0x230] sm:$0xff]  ;;  %v1827_v38 = vpack.c.bf16 %v139_v28, %v136_v27  ;;  %v1829_v39 = vpack.c.bf16 %v193_v31, %v190_v30 }
  0x96   :  { %1822 = vmatprep.subr.bf16.mxu1 %v1821_v16  ;;  %v142_v40 = vld [vmem:[#allocation5 + $0xd0] sm:$0xff]  ;;  %v145_v41 = vld [vmem:[#allocation5 + $0xe8] sm:$0xff]  ;;  %v199_v45 = vld [vmem:[#allocation5 + $0x298] sm:$0xff]  ;;  %v1661_v46 = vpack.c.bf16 %v186_v37, %v183_v36 }
  0x97   :  { %v182_v48 = vld [vmem:[#allocation5 + $0x210] sm:$0xff]  ;;  %v185_v49 = vld [vmem:[#allocation5 + $0x228] sm:$0xff]  ;;  %v192_v52 = vld [vmem:[#allocation5 + $0x260] sm:$0xff]  ;;  %v1831_v53 = vpack.c.bf16 %v145_v41, %v142_v40 }
  0x98   :  { %1640 = vmatpush1.bf16.msra.mxu0 %v1639_v43  ;;  %v1659_v43 = vpack.c.bf16 %v179_v35, %v176_v33  ;;  %v151_v56 = vld [vmem:[#allocation5 + $0x118] sm:$0xff]  ;;  %v1663_v57 = vpack.c.bf16 %v185_v49, %v182_v48  ;;  %v202_v58 = vld [vmem:[#allocation5 + $0x2b0] sm:$0xff]  ;;  %v205_v59 = vld [vmem:[#allocation5 + $0x2c8] sm:$0xff] }
  0x99   :  { %1642 = vmatprep.subr.bf16.mxu0 %v1641_v44  ;;  %1824 = vmatpush3.bf16.msra.mxu1 %v1823_v24  ;;  %v196_v44 = vld [vmem:[#allocation5 + $0x280] sm:$0xff]  ;;  %v191_v62 = vld [vmem:[#allocation5 + $0x258] sm:$0xff]  ;;  %v1837_v2 = vpack.c.bf16 %v205_v59, %v202_v58  ;;  %v154_v3 = vld [vmem:[#allocation5 + $0x130] sm:$0xff] }
  0x9a   :  { %1826 = vmatprep.subr.bf16.mxu1 %v1825_v26  ;;  %v1833_v54 = vpack.c.bf16 %v199_v45, %v196_v44  ;;  %v188_v61 = vld [vmem:[#allocation5 + $0x240] sm:$0xff]  ;;  %v195_v63 = vld [vmem:[#allocation5 + $0x278] sm:$0xff]  ;;  %v194_v9 = vld [vmem:[#allocation5 + $0x270] sm:$0xff] }
  0x9b   :  { %v1667_v5 = vpack.c.bf16 %v191_v62, %v188_v61  ;;  %v208_v6 = vld [vmem:[#allocation5 + $0x2e0] sm:$0xff]  ;;  %v211_v7 = vld [vmem:[#allocation5 + $0x2f8] sm:$0xff]  ;;  %v197_v10 = vld [vmem:[#allocation5 + $0x288] sm:$0xff] }
  0x9c   :  { %1644 = vmatpush1.bf16.msra.mxu0 %v1643_v51  ;;  %v189_v51 = vld [vmem:[#allocation5 + $0x248] sm:$0xff]  ;;  %v204_v12 = vld [vmem:[#allocation5 + $0x2c0] sm:$0xff]  ;;  %v1841_v14 = vpack.c.bf16 %v211_v7, %v208_v6  ;;  %v163_v16 = vld [vmem:[#allocation5 + $0x178] sm:$0xff]  ;;  %v1671_v17 = vpack.c.bf16 %v197_v10, %v194_v9 }
  0x9d   :  { %1646 = vmatprep.subr.bf16.mxu0 %v1645_v55  ;;  %1828 = vmatpush3.bf16.msra.mxu1 %v1827_v38  ;;  %v148_v55 = vld [vmem:[#allocation5 + $0x100] sm:$0xff]  ;;  %v1665_v60 = vpack.c.bf16 %v192_v52, %v189_v51  ;;  %v201_v11 = vld [vmem:[#allocation5 + $0x2a8] sm:$0xff]  ;;  %v262_v19 = vld [vmem:[#allocation5 + $0x490] sm:$0xff] }
  0x9e   :  { %1830 = vmatprep.subr.bf16.mxu1 %v1829_v39  ;;  %v1835_v1 = vpack.c.bf16 %v151_v56, %v148_v55  ;;  %v265_v20 = vld [vmem:[#allocation5 + $0x4a8] sm:$0xff]  ;;  %v1673_v21 = vpack.c.bf16 %v204_v12, %v201_v11  ;;  %v200_v22 = vld [vmem:[#allocation5 + $0x2a0] sm:$0xff]  ;;  %v203_v23 = vld [vmem:[#allocation5 + $0x2b8] sm:$0xff] }
  0x9f   :  { %v207_v24 = vld [vmem:[#allocation5 + $0x2d8] sm:$0xff]  ;;  %v210_v25 = vld [vmem:[#allocation5 + $0x2f0] sm:$0xff]  ;;  %v1845_v27 = vpack.c.bf16 %v265_v20, %v262_v19  ;;  %v1675_v30 = vpack.c.bf16 %v203_v23, %v200_v22  ;;  %v268_v31 = vld [vmem:[#allocation5 + $0x4c0] sm:$0xff] }
  0xa0   :  { %1648 = vmatpush1.bf16.msra.mxu0 %v1647_v0  ;;  %v198_v0 = vld [vmem:[#allocation5 + $0x290] sm:$0xff]  ;;  %v1677_v33 = vpack.c.bf16 %v210_v25, %v207_v24  ;;  %v209_v36 = vld [vmem:[#allocation5 + $0x2e8] sm:$0xff]  ;;  %v216_v38 = vld [vmem:[#allocation5 + $0x320] sm:$0xff] }
  0xa1   :  { %1650 = vmatprep.subr.bf16.mxu0 %v1649_v4  ;;  %1832 = vmatpush3.bf16.msra.mxu1 %v1831_v53  ;;  %v157_v4 = vld [vmem:[#allocation5 + $0x148] sm:$0xff]  ;;  %v1669_v8 = vpack.c.bf16 %v198_v0, %v195_v63  ;;  %v214_v28 = vld [vmem:[#allocation5 + $0x310] sm:$0xff]  ;;  %v220_v41 = vld [vmem:[#allocation5 + $0x340] sm:$0xff] }
  0xa2   :  { %1834 = vmatprep.subr.bf16.mxu1 %v1833_v54  ;;  %v1839_v13 = vpack.c.bf16 %v157_v4, %v154_v3  ;;  %v206_v35 = vld [vmem:[#allocation5 + $0x2d0] sm:$0xff]  ;;  %v213_v37 = vld [vmem:[#allocation5 + $0x308] sm:$0xff]  ;;  %v212_v51 = vld [vmem:[#allocation5 + $0x300] sm:$0xff] }
  0xa3   :  { %v1679_v44 = vpack.c.bf16 %v209_v36, %v206_v35  ;;  %v274_v45 = vld [vmem:[#allocation5 + $0x4f0] sm:$0xff]  ;;  %v1681_v49 = vpack.c.bf16 %v216_v38, %v213_v37  ;;  %v215_v52 = vld [vmem:[#allocation5 + $0x318] sm:$0xff]  ;;  %v229_v58 = vld [vmem:[#allocation5 + $0x388] sm:$0xff] }
  0xa4   :  { %1652 = vmatpush1.bf16.msra.mxu0 %v1651_v15  ;;  %v160_v15 = vld [vmem:[#allocation5 + $0x160] sm:$0xff]  ;;  %v219_v53 = vld [vmem:[#allocation5 + $0x338] sm:$0xff]  ;;  %v222_v54 = vld [vmem:[#allocation5 + $0x350] sm:$0xff]  ;;  %v1683_v59 = vpack.c.bf16 %v215_v52, %v212_v51 }
  0xa5   :  { %1654 = vmatprep.subr.bf16.mxu0 %v1653_v18  ;;  %1836 = vmatpush3.bf16.msra.mxu1 %v1835_v1  ;;  %v429_v18 = vcombine.high %v2353_v47, %v2353_v47  ;;  %v1843_v26 = vpack.c.bf16 %v163_v16, %v160_v15  ;;  %v283_v61 = vld [vmem:[#allocation5 + $0x538] sm:$0xff]  ;;  %v1685_v62 = vpack.c.bf16 %v222_v54, %v219_v53  ;;  %v218_v63 = vld [vmem:[#allocation5 + $0x330] sm:$0xff]  ;;  %v221_v0 = vld [vmem:[#allocation5 + $0x348] sm:$0xff] }
  0xa6   :  { %1838 = vmatprep.subr.bf16.mxu1 %v1837_v2  ;;  %v225_v1 = vld [vmem:[#allocation5 + $0x368] sm:$0xff]  ;;  %v228_v2 = vld [vmem:[#allocation5 + $0x380] sm:$0xff]  ;;  %v235_v6 = vld [vmem:[#allocation5 + $0x3b8] sm:$0xff]  ;;  %v1687_v7 = vpack.c.bf16 %v221_v0, %v218_v63 }
  0xa7   :  { %v2364_v47 = vrot.slane %v429_v18, %v2351_v42  ;;  %v289_v9 = vld [vmem:[#allocation5 + $0x568] sm:$0xff]  ;;  %v1689_v10 = vpack.c.bf16 %v228_v2, %v225_v1  ;;  %v224_v11 = vld [vmem:[#allocation5 + $0x360] sm:$0xff]  ;;  %v227_v12 = vld [vmem:[#allocation5 + $0x378] sm:$0xff] }
  0xa8   :  { %1656 = vmatpush1.bf16.msra.mxu0 %v1655_v29  ;;  %v217_v29 = vld [vmem:[#allocation5 + $0x328] sm:$0xff]  ;;  %v1691_v18 = vpack.c.bf16 %v227_v12, %v224_v11  ;;  %v292_v19 = vld [vmem:[#allocation5 + $0x580] sm:$0xff]  ;;  %v295_v20 = vld [vmem:[#allocation5 + $0x598] sm:$0xff] }
  0xa9   :  { %1658 = vmatprep.subr.bf16.mxu0 %v1657_v32  ;;  %1840 = vmatpush3.bf16.msra.mxu1 %v1839_v13  ;;  %v271_v32 = vld [vmem:[#allocation5 + $0x4d8] sm:$0xff]  ;;  %v1847_v39 = vpack.c.bf16 %v217_v29, %v214_v28  ;;  %v445_v48 = vcombine.high %v2364_v47, %v2364_v47  ;;  %v230_v22 = vld [vmem:[#allocation5 + $0x390] sm:$0xff]  ;;  %v233_v23 = vld [vmem:[#allocation5 + $0x3a8] sm:$0xff] }
  0xaa   :  { %1842 = vmatprep.subr.bf16.mxu1 %v1841_v14  ;;  %v1849_v40 = vpack.c.bf16 %v271_v32, %v268_v31  ;;  %v231_v13 = vld [vmem:[#allocation5 + $0x398] sm:$0xff]  ;;  %v234_v14 = vld [vmem:[#allocation5 + $0x3b0] sm:$0xff]  ;;  %v237_v24 = vld [vmem:[#allocation5 + $0x3c8] sm:$0xff] }
  0xab   :  { %v240_v25 = vld [vmem:[#allocation5 + $0x3e0] sm:$0xff]  ;;  %v247_v29 = vld [vmem:[#allocation5 + $0x418] sm:$0xff]  ;;  %v298_v31 = vld [vmem:[#allocation5 + $0x5b0] sm:$0xff] }
  0xac   :  { %1660 = vmatpush1.bf16.msra.mxu0 %v1659_v43  ;;  %v223_v43 = vld [vmem:[#allocation5 + $0x358] sm:$0xff]  ;;  %v244_v28 = vld [vmem:[#allocation5 + $0x400] sm:$0xff]  ;;  %v301_v32 = vld [vmem:[#allocation5 + $0x5c8] sm:$0xff] }
  0xad   :  { %1662 = vmatprep.subr.bf16.mxu0 %v1661_v46  ;;  %1844 = vmatpush3.bf16.msra.mxu1 %v1843_v26  ;;  %v277_v46 = vld [vmem:[#allocation5 + $0x508] sm:$0xff]  ;;  %v1851_v55 = vpack.c.bf16 %v223_v43, %v220_v41  ;;  %v236_v35 = vld [vmem:[#allocation5 + $0x3c0] sm:$0xff]  ;;  %v239_v36 = vld [vmem:[#allocation5 + $0x3d8] sm:$0xff] }
  0xae   :  { %1846 = vmatprep.subr.bf16.mxu1 %v1845_v27  ;;  %v1853_v56 = vpack.c.bf16 %v277_v46, %v274_v45  ;;  %v1865_v27 = vpack.c.bf16 %v295_v20, %v292_v19  ;;  %v243_v37 = vld [vmem:[#allocation5 + $0x3f8] sm:$0xff]  ;;  %v246_v38 = vld [vmem:[#allocation5 + $0x410] sm:$0xff]  ;;  %v253_v43 = vld [vmem:[#allocation5 + $0x448] sm:$0xff] }
  0xaf   :  { %v250_v41 = vld [vmem:[#allocation5 + $0x430] sm:$0xff]  ;;  %v304_v45 = vld [vmem:[#allocation5 + $0x5e0] sm:$0xff]  ;;  %v307_v46 = vld [vmem:[#allocation5 + $0x5f8] sm:$0xff] }
  0xb0   :  { %1664 = vmatpush1.bf16.msra.mxu0 %v1663_v57  ;;  %820 = vmatmul.mubr.f32.vlgmr.msra.gmra.mrb[0].mxu1 %v2357_v50  ;;  %v226_v57 = vld [vmem:[#allocation5 + $0x370] sm:$0xff]  ;;  %v245_v51 = vld [vmem:[#allocation5 + $0x408] sm:$0xff]  ;;  %v252_v53 = vld [vmem:[#allocation5 + $0x440] sm:$0xff]  ;;  %v1871_v54 = vpack.c.bf16 %v253_v43, %v250_v41 }
  0xb1   :  { %1666 = vmatprep.subr.bf16.mxu0 %v1665_v60  ;;  %1848 = vmatpush3.bf16.msra.mxu1 %v1847_v39  ;;  %v280_v60 = vld [vmem:[#allocation5 + $0x520] sm:$0xff]  ;;  %v1855_v3 = vpack.c.bf16 %v229_v58, %v226_v57  ;;  %v1867_v39 = vpack.c.bf16 %v247_v29, %v244_v28  ;;  %v249_v52 = vld [vmem:[#allocation5 + $0x428] sm:$0xff]  ;;  %v259_v57 = vld [vmem:[#allocation5 + $0x478] sm:$0xff] }
  0xb2   :  { %889 = vmatprep.mubr.f32.mxu1 %v445_v48  ;;  %1850 = vmatprep.subr.bf16.mxu1 %v1849_v40  ;;  %v1857_v4 = vpack.c.bf16 %v283_v61, %v280_v60  ;;  %v1869_v40 = vpack.c.bf16 %v301_v32, %v298_v31  ;;  %v361_v60 = vld [vmem:[#allocation5 + $0x7a8] sm:$0xff]  ;;  %v1705_v61 = vpack.c.bf16 %v252_v53, %v249_v52  ;;  %v251_v63 = vld [vmem:[#allocation5 + $0x438] sm:$0xff]  ;;  %v258_v1 = vld [vmem:[#allocation5 + $0x470] sm:$0xff] }
  0xb3   :  { %v255_v0 = vld [vmem:[#allocation5 + $0x458] sm:$0xff]  ;;  %v257_v11 = vld [vmem:[#allocation5 + $0x468] sm:$0xff]  ;;  %v370_v20 = vld [vmem:[#allocation5 + $0x7f0] sm:$0xff] }
  0xb4   :  { %1668 = vmatpush1.bf16.msra.mxu0 %v1667_v5  ;;  %v232_v5 = vld [vmem:[#allocation5 + $0x3a0] sm:$0xff]  ;;  %v2370_v12 = vld [vmem:[#allocation2 + $0x8] sm:$0x3f]  ;;  %v325_v31 = vld [vmem:[#allocation5 + $0x688] sm:$0xff] }
  0xb5   :  { %1670 = vmatprep.subr.bf16.mxu0 %v1669_v8  ;;  %1852 = vmatpush3.bf16.msra.mxu1 %v1851_v55  ;;  %v286_v8 = vld [vmem:[#allocation5 + $0x550] sm:$0xff]  ;;  %v1859_v15 = vpack.c.bf16 %v235_v6, %v232_v5  ;;  %v1873_v55 = vpack.c.bf16 %v307_v46, %v304_v45  ;;  %v313_v5 = vld [vmem:[#allocation5 + $0x628] sm:$0xff]  ;;  %v331_v45 = vld [vmem:[#allocation5 + $0x6b8] sm:$0xff] }
  0xb6   :  { %1854 = vmatprep.subr.bf16.mxu1 %v1853_v56  ;;  %v1861_v16 = vpack.c.bf16 %v289_v9, %v286_v8  ;;  %v256_v56 = vld [vmem:[#allocation5 + $0x460] sm:$0xff]  ;;  %v367_v8 = vld [vmem:[#allocation5 + $0x7d8] sm:$0xff]  ;;  %v1709_v9 = vpack.c.bf16 %v258_v1, %v255_v0  ;;  %v278_v0 = vld [vmem:[#allocation5 + $0x510] sm:$0xff] }
  0xb7   :  { %v1875_v2 = vpack.c.bf16 %v259_v57, %v256_v56  ;;  %v272_v52 = vld [vmem:[#allocation5 + $0x4e0] sm:$0xff]  ;;  %v275_v53 = vld [vmem:[#allocation5 + $0x4f8] sm:$0xff]  ;;  %v281_v1 = vld [vmem:[#allocation5 + $0x528] sm:$0xff] }
  0xb8   :  { %1672 = vmatpush1.bf16.msra.mxu0 %v1671_v17  ;;  %v241_v17 = vld [vmem:[#allocation5 + $0x3e8] sm:$0xff] }
  0xb9   :  { %1674 = vmatprep.subr.bf16.mxu0 %v1673_v21  ;;  %1856 = vmatpush3.bf16.msra.mxu1 %v1855_v3  ;;  %v1693_v21 = vpack.c.bf16 %v234_v14, %v231_v13  ;;  %v261_v13 = vld [vmem:[#allocation5 + $0x488] sm:$0xff]  ;;  %v264_v14 = vld [vmem:[#allocation5 + $0x4a0] sm:$0xff] }
  0xba   :  { %1858 = vmatprep.subr.bf16.mxu1 %v1857_v4  ;;  %v310_v4 = vld [vmem:[#allocation5 + $0x610] sm:$0xff] }
  0xbc   :  { %1676 = vmatpush1.bf16.msra.mxu0 %v1675_v30  ;;  %v1695_v30 = vpack.c.bf16 %v233_v23, %v230_v22  ;;  %v1713_v23 = vpack.c.bf16 %v264_v14, %v261_v13  ;;  %v284_v13 = vld [vmem:[#allocation5 + $0x540] sm:$0xff]  ;;  %v287_v14 = vld [vmem:[#allocation5 + $0x558] sm:$0xff] }
  0xbd   :  { %1678 = vmatprep.subr.bf16.mxu0 %v1677_v33  ;;  %1860 = vmatpush3.bf16.msra.mxu1 %v1859_v15  ;;  %v1697_v33 = vpack.c.bf16 %v240_v25, %v237_v24  ;;  %v1879_v15 = vpack.c.bf16 %v313_v5, %v310_v4  ;;  %v260_v24 = vld [vmem:[#allocation5 + $0x480] sm:$0xff]  ;;  %v263_v25 = vld [vmem:[#allocation5 + $0x498] sm:$0xff] }
  0xbe   :  { %1862 = vmatprep.subr.bf16.mxu1 %v1861_v16  ;;  %v2374_v16 = vrot.slane %v2370_v12, %v2351_v42  ;;  %v1715_v32 = vpack.c.bf16 %v263_v25, %v260_v24  ;;  %v403_v24 = vld [vmem:[#allocation5 + $0x8f8] sm:$0xff] }
  0xc0   :  { %1680 = vmatpush1.bf16.msra.mxu0 %v1679_v44  ;;  %v1699_v44 = vpack.c.bf16 %v239_v36, %v236_v35  ;;  %v2378_v22 = vcombine.high %v2374_v16, %v2374_v16  ;;  %v379_v35 = vld [vmem:[#allocation5 + $0x838] sm:$0xff] }
  0xc1   :  { %1682 = vmatprep.subr.bf16.mxu0 %v1681_v49  ;;  %v242_v49 = vld [vmem:[#allocation5 + $0x3f0] sm:$0xff] }
  0xc2   :  { %v1703_v58 = vpack.c.bf16 %v245_v51, %v242_v49  ;;  %v385_v49 = vld [vmem:[#allocation5 + $0x868] sm:$0xff] }
  0xc3   :  { %536 = vmatmul.mubr.f32.vlgmr.msra.gmra.mrb[0].mxu0 %v2357_v50  ;;  %v238_v50 = vld [vmem:[#allocation5 + $0x3d0] sm:$0xff] }
  0xc4   :  { %1684 = vmatpush1.bf16.msra.mxu0 %v1683_v59  ;;  %606 = vmatprep.mubr.f32.mxu0 %v445_v48  ;;  %v1863_v26 = vpack.c.bf16 %v241_v17, %v238_v50  ;;  %v1701_v48 = vpack.c.bf16 %v246_v38, %v243_v37  ;;  %v358_v59 = vld [vmem:[#allocation5 + $0x790] sm:$0xff]  ;;  %v316_v17 = vld [vmem:[#allocation5 + $0x640] sm:$0xff]  ;;  %v269_v38 = vld [vmem:[#allocation5 + $0x4c8] sm:$0xff] }
  0xc5   :  { %1686 = vmatprep.subr.bf16.mxu0 %v1685_v62  ;;  %v248_v62 = vld [vmem:[#allocation5 + $0x420] sm:$0xff]  ;;  %v1877_v3 = vpack.c.bf16 %v361_v60, %v358_v59  ;;  %v266_v37 = vld [vmem:[#allocation5 + $0x4b0] sm:$0xff]  ;;  %v337_v59 = vld [vmem:[#allocation5 + $0x6e8] sm:$0xff]  ;;  %v1723_v60 = vpack.c.bf16 %v275_v53, %v272_v52 }
  0xc6   :  { %1864 = vmatpush3.bf16.msra.mxu1 %v1863_v26  ;;  %v1707_v6 = vpack.c.bf16 %v251_v63, %v248_v62  ;;  %v267_v26 = vld [vmem:[#allocation5 + $0x4b8] sm:$0xff]  ;;  %v1719_v46 = vpack.c.bf16 %v269_v38, %v266_v37  ;;  %v296_v37 = vld [vmem:[#allocation5 + $0x5a0] sm:$0xff]  ;;  %v309_v52 = vld [vmem:[#allocation5 + $0x608] sm:$0xff] }
  0xc7   :  { %1866 = vmatprep.subr.bf16.mxu1 %v1865_v27  ;;  %v270_v27 = vld [vmem:[#allocation5 + $0x4d0] sm:$0xff]  ;;  %v391_v62 = vld [vmem:[#allocation5 + $0x898] sm:$0xff]  ;;  %v312_v53 = vld [vmem:[#allocation5 + $0x620] sm:$0xff] }
  0xc8   :  { %1688 = vmatpush1.bf16.msra.mxu0 %v1687_v7  ;;  %v364_v7 = vld [vmem:[#allocation5 + $0x7c0] sm:$0xff]  ;;  %v1717_v36 = vpack.c.bf16 %v270_v27, %v267_v26  ;;  %v290_v26 = vld [vmem:[#allocation5 + $0x570] sm:$0xff]  ;;  %v293_v27 = vld [vmem:[#allocation5 + $0x588] sm:$0xff] }
  0xc9   :  { %1690 = vmatprep.subr.bf16.mxu0 %v1689_v10  ;;  %v254_v10 = vld [vmem:[#allocation5 + $0x450] sm:$0xff]  ;;  %v1881_v50 = vpack.c.bf16 %v367_v8, %v364_v7  ;;  %v343_v7 = vld [vmem:[#allocation5 + $0x718] sm:$0xff]  ;;  %v1727_v8 = vpack.c.bf16 %v281_v1, %v278_v0 }
  0xca   :  { %1868 = vmatpush3.bf16.msra.mxu1 %v1867_v39  ;;  %v1711_v19 = vpack.c.bf16 %v257_v11, %v254_v10  ;;  %v273_v39 = vld [vmem:[#allocation5 + $0x4e8] sm:$0xff]  ;;  %v299_v38 = vld [vmem:[#allocation5 + $0x5b8] sm:$0xff]  ;;  %v314_v1 = vld [vmem:[#allocation5 + $0x630] sm:$0xff] }
  0xcb   :  { %1870 = vmatprep.subr.bf16.mxu1 %v1869_v40  ;;  %v276_v40 = vld [vmem:[#allocation5 + $0x500] sm:$0xff]  ;;  %v397_v10 = vld [vmem:[#allocation5 + $0x8c8] sm:$0xff] }
  0xcc   :  { %1692 = vmatpush1.bf16.msra.mxu0 %v1691_v18  ;;  %v319_v18 = vld [vmem:[#allocation5 + $0x658] sm:$0xff]  ;;  %v1721_v51 = vpack.c.bf16 %v276_v40, %v273_v39  ;;  %v306_v40 = vld [vmem:[#allocation5 + $0x5f0] sm:$0xff] }
  0xcd   :  { %1694 = vmatprep.subr.bf16.mxu0 %v1693_v21  ;;  %v373_v21 = vld [vmem:[#allocation5 + $0x808] sm:$0xff]  ;;  %v1883_v28 = vpack.c.bf16 %v319_v18, %v316_v17  ;;  %v303_v39 = vld [vmem:[#allocation5 + $0x5d8] sm:$0xff] }
  0xce   :  { %1872 = vmatpush3.bf16.msra.mxu1 %v1871_v54  ;;  %v1885_v29 = vpack.c.bf16 %v373_v21, %v370_v20  ;;  %v279_v54 = vld [vmem:[#allocation5 + $0x518] sm:$0xff]  ;;  %v349_v20 = vld [vmem:[#allocation5 + $0x748] sm:$0xff]  ;;  %v1731_v21 = vpack.c.bf16 %v287_v14, %v284_v13  ;;  %v326_v13 = vld [vmem:[#allocation5 + $0x690] sm:$0xff] }
  0xcf   :  { %1874 = vmatprep.subr.bf16.mxu1 %v1873_v55  ;;  %v282_v55 = vld [vmem:[#allocation5 + $0x530] sm:$0xff]  ;;  %v329_v14 = vld [vmem:[#allocation5 + $0x6a8] sm:$0xff] }
  0xd0   :  { %1696 = vmatpush1.bf16.msra.mxu0 %v1695_v30  ;;  %v322_v30 = vld [vmem:[#allocation5 + $0x670] sm:$0xff]  ;;  %v1725_v63 = vpack.c.bf16 %v282_v55, %v279_v54  ;;  %v2220_v55 = vmov 0.0|0.0  }
  0xd1   :  { %1698 = vmatprep.subr.bf16.mxu0 %v1697_v33  ;;  %v376_v33 = vld [vmem:[#allocation5 + $0x820] sm:$0xff]  ;;  %v1887_v41 = vpack.c.bf16 %v325_v31, %v322_v30 }
  0xd2   :  { %1876 = vmatpush3.bf16.msra.mxu1 %v1875_v2  ;;  %v1889_v43 = vpack.c.bf16 %v379_v35, %v376_v33  ;;  %v285_v2 = vld [vmem:[#allocation5 + $0x548] sm:$0xff]  ;;  %v355_v33 = vld [vmem:[#allocation5 + $0x778] sm:$0xff]  ;;  %v1735_v35 = vpack.c.bf16 %v293_v27, %v290_v26  ;;  %v348_v27 = vld [vmem:[#allocation5 + $0x740] sm:$0xff] }
  0xd3   :  { %1878 = vmatprep.subr.bf16.mxu1 %v1877_v3  ;;  %v288_v3 = vld [vmem:[#allocation5 + $0x560] sm:$0xff]  ;;  %v345_v26 = vld [vmem:[#allocation5 + $0x728] sm:$0xff] }
  0xd4   :  { %1700 = vmatpush1.bf16.msra.mxu0 %v1699_v44  ;;  %v328_v44 = vld [vmem:[#allocation5 + $0x6a0] sm:$0xff]  ;;  %v1729_v11 = vpack.c.bf16 %v288_v3, %v285_v2  ;;  %v317_v2 = vld [vmem:[#allocation5 + $0x648] sm:$0xff] }
  0xd5   :  { %1702 = vmatprep.subr.bf16.mxu0 %v1701_v48  ;;  %890 = vmatmul.mubr.f32.vlgmr.msra.gmra.mrb[2].mxu1 %v2364_v47  ;;  %v382_v48 = vld [vmem:[#allocation5 + $0x850] sm:$0xff]  ;;  %v1891_v56 = vpack.c.bf16 %v331_v45, %v328_v44  ;;  %v409_v44 = vld [vmem:[#allocation5 + $0x928] sm:$0xff]  ;;  %v1739_v45 = vpack.c.bf16 %v299_v38, %v296_v37  ;;  %v324_v3 = vld [vmem:[#allocation5 + $0x680] sm:$0xff] }
  0xd6   :  { %1880 = vmatpush3.bf16.msra.mxu1 %v1879_v15  ;;  %959 = vmatprep.mubr.f32.mxu1 %v2378_v22  ;;  %v1893_v57 = vpack.c.bf16 %v385_v49, %v382_v48  ;;  %v291_v15 = vld [vmem:[#allocation5 + $0x578] sm:$0xff]  ;;  %v302_v48 = vld [vmem:[#allocation5 + $0x5d0] sm:$0xff]  ;;  %v305_v49 = vld [vmem:[#allocation5 + $0x5e8] sm:$0xff] }
  0xd7   :  { %1882 = vmatprep.subr.bf16.mxu1 %v1881_v50  ;;  %v294_v50 = vld [vmem:[#allocation5 + $0x590] sm:$0xff]  ;;  %v353_v38 = vld [vmem:[#allocation5 + $0x768] sm:$0xff] }
  0xd8   :  { %1704 = vmatpush1.bf16.msra.mxu0 %v1703_v58  ;;  %v334_v58 = vld [vmem:[#allocation5 + $0x6d0] sm:$0xff]  ;;  %v1733_v25 = vpack.c.bf16 %v294_v50, %v291_v15  ;;  %v333_v15 = vld [vmem:[#allocation5 + $0x6c8] sm:$0xff]  ;;  %v336_v50 = vld [vmem:[#allocation5 + $0x6e0] sm:$0xff] }
  0xd9   :  { %1706 = vmatprep.subr.bf16.mxu0 %v1705_v61  ;;  %v388_v61 = vld [vmem:[#allocation5 + $0x880] sm:$0xff]  ;;  %v1895_v4 = vpack.c.bf16 %v337_v59, %v334_v58  ;;  %v311_v59 = vld [vmem:[#allocation5 + $0x618] sm:$0xff]  ;;  %v350_v37 = vld [vmem:[#allocation5 + $0x750] sm:$0xff] }
  0xda   :  { %1884 = vmatpush3.bf16.msra.mxu1 %v1883_v28  ;;  %v1897_v5 = vpack.c.bf16 %v391_v62, %v388_v61  ;;  %v297_v28 = vld [vmem:[#allocation5 + $0x5a8] sm:$0xff]  ;;  %v308_v58 = vld [vmem:[#allocation5 + $0x600] sm:$0xff]  ;;  %v315_v61 = vld [vmem:[#allocation5 + $0x638] sm:$0xff]  ;;  %v2222_v62 = vmov 0.0  }
  0xdb   :  { %1886 = vmatprep.subr.bf16.mxu1 %v1885_v29  ;;  %v300_v29 = vld [vmem:[#allocation5 + $0x5c0] sm:$0xff] }
  0xdc   :  { %1708 = vmatpush1.bf16.msra.mxu0 %v1707_v6  ;;  %v340_v6 = vld [vmem:[#allocation5 + $0x700] sm:$0xff] }
  0xdd   :  { %1710 = vmatprep.subr.bf16.mxu0 %v1709_v9  ;;  %v394_v9 = vld [vmem:[#allocation5 + $0x8b0] sm:$0xff]  ;;  %v1899_v17 = vpack.c.bf16 %v343_v7, %v340_v6  ;;  %v320_v6 = vld [vmem:[#allocation5 + $0x660] sm:$0xff]  ;;  %v323_v7 = vld [vmem:[#allocation5 + $0x678] sm:$0xff] }
  0xde   :  { %1888 = vmatpush3.bf16.msra.mxu1 %v1887_v41  ;;  %v1901_v18 = vpack.c.bf16 %v397_v10, %v394_v9  ;;  %v330_v9 = vld [vmem:[#allocation5 + $0x6b0] sm:$0xff]  ;;  %v1755_v10 = vpack.c.bf16 %v323_v7, %v320_v6  ;;  %v380_v7 = vld [vmem:[#allocation5 + $0x840] sm:$0xff] }
  0xdf   :  { %1890 = vmatprep.subr.bf16.mxu1 %v1889_v43  ;;  %v406_v43 = vld [vmem:[#allocation5 + $0x910] sm:$0xff] }
  0xe0   :  { %1712 = vmatpush1.bf16.msra.mxu0 %v1711_v19  ;;  %v346_v19 = vld [vmem:[#allocation5 + $0x730] sm:$0xff]  ;;  %v1910_v54 = vpack.c.bf16 %v409_v44, %v406_v43  ;;  %v356_v44 = vld [vmem:[#allocation5 + $0x780] sm:$0xff] }
  0xe1   :  { %1714 = vmatprep.subr.bf16.mxu0 %v1713_v23  ;;  %v400_v23 = vld [vmem:[#allocation5 + $0x8e0] sm:$0xff]  ;;  %v1903_v30 = vpack.c.bf16 %v349_v20, %v346_v19  ;;  %v339_v19 = vld [vmem:[#allocation5 + $0x6f8] sm:$0xff]  ;;  %v342_v20 = vld [vmem:[#allocation5 + $0x710] sm:$0xff] }
  0xe2   :  { %1892 = vmatpush3.bf16.msra.mxu1 %v1891_v56  ;;  %v1905_v31 = vpack.c.bf16 %v403_v24, %v400_v23  ;;  %v1743_v56 = vpack.c.bf16 %v305_v49, %v302_v48  ;;  %v1765_v23 = vpack.c.bf16 %v342_v20, %v339_v19  ;;  %v338_v24 = vld [vmem:[#allocation5 + $0x6f0] sm:$0xff]  ;;  %v395_v19 = vld [vmem:[#allocation5 + $0x8b8] sm:$0xff] }
  0xe3   :  { %1894 = vmatprep.subr.bf16.mxu1 %v1893_v57  ;;  %v1745_v57 = vpack.c.bf16 %v312_v53, %v309_v52  ;;  %v366_v48 = vld [vmem:[#allocation5 + $0x7d0] sm:$0xff]  ;;  %v365_v53 = vld [vmem:[#allocation5 + $0x7c8] sm:$0xff]  ;;  %v399_v20 = vld [vmem:[#allocation5 + $0x8d8] sm:$0xff] }
  0xe4   :  { %1716 = vmatpush1.bf16.msra.mxu0 %v1715_v32  ;;  %v352_v32 = vld [vmem:[#allocation5 + $0x760] sm:$0xff]  ;;  %v362_v52 = vld [vmem:[#allocation5 + $0x7b0] sm:$0xff] }
  0xe5   :  { %1718 = vmatprep.subr.bf16.mxu0 %v1717_v36  ;;  %v1737_v36 = vpack.c.bf16 %v300_v29, %v297_v28  ;;  %v1907_v41 = vpack.c.bf16 %v355_v33, %v352_v32  ;;  %v1769_v29 = vpack.c.bf16 %v348_v27, %v345_v26  ;;  %v351_v32 = vld [vmem:[#allocation5 + $0x758] sm:$0xff]  ;;  %v354_v33 = vld [vmem:[#allocation5 + $0x770] sm:$0xff]  ;;  %v401_v26 = vld [vmem:[#allocation5 + $0x8e8] sm:$0xff] }
  0xe6   :  { %1896 = vmatpush3.bf16.msra.mxu1 %v1895_v4  ;;  %v1751_v4 = vpack.c.bf16 %v317_v2, %v314_v1  ;;  %v374_v2 = vld [vmem:[#allocation5 + $0x810] sm:$0xff]  ;;  %v405_v27 = vld [vmem:[#allocation5 + $0x908] sm:$0xff] }
  0xe7   :  { %1898 = vmatprep.subr.bf16.mxu1 %v1897_v5 }
  0xe8   :  { %1720 = vmatpush1.bf16.msra.mxu0 %v1719_v46  ;;  %v1741_v46 = vpack.c.bf16 %v306_v40, %v303_v39  ;;  %v357_v39 = vld [vmem:[#allocation5 + $0x788] sm:$0xff]  ;;  %v360_v40 = vld [vmem:[#allocation5 + $0x7a0] sm:$0xff] }
  0xe9   :  { %1722 = vmatprep.subr.bf16.mxu0 %v1721_v51  ;;  %v446_v51 = vcombine.high %v2370_v12, %v2370_v12  ;;  %v318_v12 = vld [vmem:[#allocation5 + $0x650] sm:$0xff]  ;;  %v1777_v43 = vpack.c.bf16 %v360_v40, %v357_v39  ;;  %v1039_v39 = vld [vmem:[#allocation8 + $0x8] sm:$0xff]  ;;  %v1056_v40 = vld [vmem:[#allocation8 + $0x90] sm:$0xff] }
  0xea   :  { %1900 = vmatpush3.bf16.msra.mxu1 %v1899_v17  ;;  %v1749_v0 = vpack.c.bf16 %v318_v12, %v315_v61  ;;  %v1761_v17 = vpack.c.bf16 %v336_v50, %v333_v15  ;;  %v371_v61 = vld [vmem:[#allocation5 + $0x7f8] sm:$0xff]  ;;  %v389_v15 = vld [vmem:[#allocation5 + $0x888] sm:$0xff] }
  0xeb   :  { %1902 = vmatprep.subr.bf16.mxu1 %v1901_v18  ;;  %v332_v18 = vld [vmem:[#allocation5 + $0x6c0] sm:$0xff]  ;;  %v375_v12 = vld [vmem:[#allocation5 + $0x818] sm:$0xff]  ;;  %v393_v50 = vld [vmem:[#allocation5 + $0x8a8] sm:$0xff] }
  0xec   :  { %1724 = vmatpush1.bf16.msra.mxu0 %v1723_v60  ;;  %v2387_v60 = vrot.slane %v446_v51, %v2351_v42  ;;  %v321_v42 = vld [vmem:[#allocation5 + $0x668] sm:$0xff] }
  0xed   :  { %1726 = vmatprep.subr.bf16.mxu0 %v1725_v63  ;;  %v1747_v63 = vpack.c.bf16 %v311_v59, %v308_v58  ;;  %v1753_v5 = vpack.c.bf16 %v324_v3, %v321_v42  ;;  %v368_v59 = vld [vmem:[#allocation5 + $0x7e0] sm:$0xff]  ;;  %v377_v42 = vld [vmem:[#allocation5 + $0x828] sm:$0xff] }
  0xee   :  { %1904 = vmatpush3.bf16.msra.mxu1 %v1903_v30  ;;  %v344_v30 = vld [vmem:[#allocation5 + $0x720] sm:$0xff]  ;;  %v381_v3 = vld [vmem:[#allocation5 + $0x848] sm:$0xff] }
  0xef   :  { %1906 = vmatprep.subr.bf16.mxu1 %v1905_v31  ;;  %v347_v31 = vld [vmem:[#allocation5 + $0x738] sm:$0xff] }
  0xf0   :  { %1728 = vmatpush1.bf16.msra.mxu0 %v1727_v8  ;;  %v327_v8 = vld [vmem:[#allocation5 + $0x698] sm:$0xff] }
  0xf1   :  { %1730 = vmatprep.subr.bf16.mxu0 %v1729_v11  ;;  %v1757_v11 = vpack.c.bf16 %v330_v9, %v327_v8  ;;  %v383_v8 = vld [vmem:[#allocation5 + $0x858] sm:$0xff] }
  0xf2   :  { %1908 = vmatpush3.bf16.msra.mxu1 %v1907_v41  ;;  %v1775_v41 = vpack.c.bf16 %v353_v38, %v350_v37  ;;  %v387_v9 = vld [vmem:[#allocation5 + $0x878] sm:$0xff] }
  0xf3   :  { %1909 = vmatprep.subr.bf16.mxu1 %v2220_v55  ;;  %v1038_v37 = vld [vmem:[#allocation8] sm:$0xff] }
  0xf4   :  { %1732 = vmatpush1.bf16.msra.mxu0 %v1731_v21 }
  0xf5   :  { %1734 = vmatprep.subr.bf16.mxu0 %v1733_v25  ;;  %960 = vmatmul.mubr.f32.vlgmr.msra.gmra.mrb[4].mxu1 %v2374_v16  ;;  %v341_v25 = vld [vmem:[#allocation5 + $0x708] sm:$0xff] }
  0xf6   :  { %1911 = vmatpush3.bf16.msra.mxu1 %v1910_v54  ;;  %1544 = vmatprep.mubr.msk.f32.mxu1 %vm2221_vm0, %v2222_v62  ;;  %v1767_v28 = vpack.c.bf16 %v341_v25, %v338_v24  ;;  %v369_v54 = vld [vmem:[#allocation5 + $0x7e8] sm:$0xff]  ;;  %v398_v25 = vld [vmem:[#allocation5 + $0x8d0] sm:$0xff] }
  0xf8   :  { %1736 = vmatpush1.bf16.msra.mxu0 %v1735_v35  ;;  %v1771_v35 = vpack.c.bf16 %v347_v31, %v344_v30  ;;  %v404_v31 = vld [vmem:[#allocation5 + $0x900] sm:$0xff] }
  0xf9   :  { %1738 = vmatprep.subr.bf16.mxu0 %v1737_v36  ;;  %1545 = vmatmul.mubr.msk.f32.vlgmr.msra.gmra.mrb[6].mxu1 %vm468_vm1, %v2387_v60  ;;  %v1773_v36 = vpack.c.bf16 %v354_v33, %v351_v32  ;;  %v407_v32 = vld [vmem:[#allocation5 + $0x918] sm:$0xff] }
  0xfa   :  { %v1811_v33 = vpack.c.bf16 %v407_v32, %v404_v31 }
  0xfc   :  { %1740 = vmatpush1.bf16.msra.mxu0 %v1739_v45  ;;  %v359_v45 = vld [vmem:[#allocation5 + $0x798] sm:$0xff] }
  0xfd   :  { %1742 = vmatprep.subr.bf16.mxu0 %v1741_v46  ;;  %v363_v46 = vld [vmem:[#allocation5 + $0x7b8] sm:$0xff]  ;;  %v1779_v49 = vpack.c.bf16 %v359_v45, %v356_v44  ;;  %v1040_v45 = vld [vmem:[#allocation8 + $0x10] sm:$0xff] }
  0xfe   :  { %v1781_v51 = vpack.c.bf16 %v366_v48, %v363_v46  ;;  %v1041_v46 = vld [vmem:[#allocation8 + $0x18] sm:$0xff]  ;;  %v1058_v48 = vld [vmem:[#allocation8 + $0xa0] sm:$0xff] }
 0x100   :  { %1744 = vmatpush1.bf16.msra.mxu0 %v1743_v56  ;;  %v372_v56 = vld [vmem:[#allocation5 + $0x800] sm:$0xff] }
 0x101   :  { %1746 = vmatprep.subr.bf16.mxu0 %v1745_v57  ;;  %v1783_v57 = vpack.c.bf16 %v365_v53, %v362_v52  ;;  %v1785_v58 = vpack.c.bf16 %v372_v56, %v369_v54  ;;  %v1042_v52 = vld [vmem:[#allocation8 + $0x20] sm:$0xff]  ;;  %v1060_v53 = vld [vmem:[#allocation8 + $0xb0] sm:$0xff]  ;;  %v1061_v54 = vld [vmem:[#allocation8 + $0xb8] sm:$0xff] }
 0x103   :  { %607 = vmatmul.mubr.f32.vlgmr.msra.gmra.mrb[0].mxu0 %v2364_v47  ;;  %v1759_v47 = vpack.c.bf16 %v329_v14, %v326_v13  ;;  %v386_v14 = vld [vmem:[#allocation5 + $0x870] sm:$0xff] }
 0x104   :  { %1748 = vmatpush1.bf16.msra.mxu0 %v1747_v63  ;;  %677 = vmatprep.mubr.f32.mxu0 %v2378_v22  ;;  %v335_v22 = vld [vmem:[#allocation5 + $0x6d8] sm:$0xff]  ;;  %v378_v63 = vld [vmem:[#allocation5 + $0x830] sm:$0xff] }
 0x105   :  { %1750 = vmatprep.subr.bf16.mxu0 %v1749_v0  ;;  %v1763_v21 = vpack.c.bf16 %v335_v22, %v332_v18  ;;  %v1787_v0 = vpack.c.bf16 %v371_v61, %v368_v59  ;;  %v1789_v1 = vpack.c.bf16 %v378_v63, %v375_v12  ;;  %v392_v22 = vld [vmem:[#allocation5 + $0x8a0] sm:$0xff]  ;;  %v1045_v59 = vld [vmem:[#allocation8 + $0x38] sm:$0xff]  ;;  %v1062_v61 = vld [vmem:[#allocation8 + $0xc0] sm:$0xff] }
 0x106   :  { %v1063_v12 = vld [vmem:[#allocation8 + $0xc8] sm:$0xff] }
 0x108   :  { %1752 = vmatpush1.bf16.msra.mxu0 %v1751_v4  ;;  %v384_v4 = vld [vmem:[#allocation5 + $0x860] sm:$0xff] }
 0x109   :  { %1754 = vmatprep.subr.bf16.mxu0 %v1753_v5  ;;  %v1791_v5 = vpack.c.bf16 %v377_v42, %v374_v2  ;;  %v1793_v6 = vpack.c.bf16 %v384_v4, %v381_v3  ;;  %v1047_v2 = vld [vmem:[#allocation8 + $0x48] sm:$0xff]  ;;  %v1064_v42 = vld [vmem:[#allocation8 + $0xd0] sm:$0xff]  ;;  %v1065_v3 = vld [vmem:[#allocation8 + $0xd8] sm:$0xff] }
 0x10c   :  { %1756 = vmatpush1.bf16.msra.mxu0 %v1755_v10  ;;  %v390_v10 = vld [vmem:[#allocation5 + $0x890] sm:$0xff] }
 0x10d   :  { %1758 = vmatprep.subr.bf16.mxu0 %v1757_v11  ;;  %v1795_v11 = vpack.c.bf16 %v383_v8, %v380_v7  ;;  %v1797_v13 = vpack.c.bf16 %v390_v10, %v387_v9  ;;  %v1049_v7 = vld [vmem:[#allocation8 + $0x58] sm:$0xff]  ;;  %v1066_v8 = vld [vmem:[#allocation8 + $0xe0] sm:$0xff]  ;;  %v1067_v9 = vld [vmem:[#allocation8 + $0xe8] sm:$0xff] }
 0x110   :  { %1760 = vmatpush1.bf16.msra.mxu0 %v1759_v47  ;;  %v396_v47 = vld [vmem:[#allocation5 + $0x8c0] sm:$0xff] }
 0x111   :  { %1762 = vmatprep.subr.bf16.mxu0 %v1761_v17  ;;  %v1799_v17 = vpack.c.bf16 %v389_v15, %v386_v14  ;;  %v1801_v18 = vpack.c.bf16 %v396_v47, %v393_v50  ;;  %v1051_v14 = vld [vmem:[#allocation8 + $0x68] sm:$0xff] }
 0x114   :  { %1764 = vmatpush1.bf16.msra.mxu0 %v1763_v21  ;;  %v402_v21 = vld [vmem:[#allocation5 + $0x8f0] sm:$0xff] }
 0x115   :  { %1766 = vmatprep.subr.bf16.mxu0 %v1765_v23  ;;  %v1803_v23 = vpack.c.bf16 %v395_v19, %v392_v22  ;;  %v1805_v24 = vpack.c.bf16 %v402_v21, %v399_v20  ;;  %v1069_v22 = vld [vmem:[#allocation8 + $0xf8] sm:$0xff]  ;;  %v1052_v20 = vld [vmem:[#allocation8 + $0x70] sm:$0xff] }
 0x116   :  { %v1053_v21 = vld [vmem:[#allocation8 + $0x78] sm:$0xff] }
 0x118   :  { %1768 = vmatpush1.bf16.msra.mxu0 %v1767_v28  ;;  %v408_v28 = vld [vmem:[#allocation5 + $0x920] sm:$0xff] }
 0x119   :  { %1770 = vmatprep.subr.bf16.mxu0 %v1769_v29  ;;  %v1807_v29 = vpack.c.bf16 %v401_v26, %v398_v25  ;;  %v1809_v30 = vpack.c.bf16 %v408_v28, %v405_v27  ;;  %v410_v25 = vld [vmem:[#allocation7] sm:$0x7] }
 0x11c   :  { %1772 = vmatpush1.bf16.msra.mxu0 %v1771_v35  ;;  %v1054_v35 = vld [vmem:[#allocation8 + $0x80] sm:$0xff] }
 0x11d   :  { %1774 = vmatprep.subr.bf16.mxu0 %v1773_v36  ;;  %v1055_v36 = vld [vmem:[#allocation8 + $0x88] sm:$0xff] }
 0x11e   :  { %v1912_v38 = vpack.c.bf16 %v1055_v36, %v1054_v35 }
 0x120   :  { %1776 = vmatpush1.bf16.msra.mxu0 %v1775_v41  ;;  %v1057_v41 = vld [vmem:[#allocation8 + $0x98] sm:$0xff]  ;;  %1913 = vmatprep.subr.bf16.mxu1 %v1912_v38 }
 0x121   :  { %1778 = vmatprep.subr.bf16.mxu0 %v1777_v43  ;;  %v1914_v43 = vpack.c.bf16 %v1039_v39, %v1038_v37  ;;  %v1916_v44 = vpack.c.bf16 %v1057_v41, %v1056_v40  ;;  %v414_v40 = vsub.s32 0, %v2348_v34  ;;  %v418_v41 = vsub.s32 1, %v2348_v34 }
 0x123   :  { %1915 = vmatpush3.bf16.msra.mxu1 %v1914_v43  ;;  %v415_v43 = vrot.slane %v410_v25, %v414_v40 }
 0x124   :  { %1780 = vmatpush1.bf16.msra.mxu0 %v1779_v49  ;;  %v1918_v49 = vpack.c.bf16 %v1041_v46, %v1040_v45  ;;  %1917 = vmatprep.subr.bf16.mxu1 %v1916_v44  ;;  %v419_v44 = vrot.slane %v410_v25, %v418_v41 }
 0x125   :  { %1782 = vmatprep.subr.bf16.mxu0 %v1781_v51 }
 0x127   :  { %1919 = vmatpush3.bf16.msra.mxu1 %v1918_v49  ;;  %v1071_v49 = vld [vmem:[#allocation8 + $0x108] sm:$0xff] }
 0x128   :  { %1784 = vmatpush1.bf16.msra.mxu0 %v1783_v57  ;;  %v1924_v57 = vpack.c.bf16 %v1061_v54, %v1060_v53  ;;  %v1072_v54 = vld [vmem:[#allocation8 + $0x110] sm:$0xff] }
 0x129   :  { %1786 = vmatprep.subr.bf16.mxu0 %v1785_v58  ;;  %v1044_v58 = vld [vmem:[#allocation8 + $0x30] sm:$0xff] }
 0x12a   :  { %v1926_v63 = vpack.c.bf16 %v1045_v59, %v1044_v58  ;;  %v1075_v58 = vld [vmem:[#allocation8 + $0x128] sm:$0xff] }
 0x12c   :  { %1788 = vmatpush1.bf16.msra.mxu0 %v1787_v0  ;;  %v1928_v0 = vpack.c.bf16 %v1063_v12, %v1062_v61  ;;  %v1076_v61 = vld [vmem:[#allocation8 + $0x130] sm:$0xff]  ;;  %v1077_v12 = vld [vmem:[#allocation8 + $0x138] sm:$0xff] }
 0x12d   :  { %1790 = vmatprep.subr.bf16.mxu0 %v1789_v1  ;;  %v1046_v1 = vld [vmem:[#allocation8 + $0x40] sm:$0xff] }
 0x12e   :  { %v1930_v4 = vpack.c.bf16 %v1047_v2, %v1046_v1  ;;  %v1079_v1 = vld [vmem:[#allocation8 + $0x148] sm:$0xff] }
 0x130   :  { %1792 = vmatpush1.bf16.msra.mxu0 %v1791_v5  ;;  %v1932_v5 = vpack.c.bf16 %v1065_v3, %v1064_v42  ;;  %v1080_v42 = vld [vmem:[#allocation8 + $0x150] sm:$0xff]  ;;  %v1081_v3 = vld [vmem:[#allocation8 + $0x158] sm:$0xff] }
 0x131   :  { %1794 = vmatprep.subr.bf16.mxu0 %v1793_v6  ;;  %v1048_v6 = vld [vmem:[#allocation8 + $0x50] sm:$0xff] }
 0x132   :  { %v1934_v10 = vpack.c.bf16 %v1049_v7, %v1048_v6  ;;  %v1083_v6 = vld [vmem:[#allocation8 + $0x168] sm:$0xff] }
 0x134   :  { %1796 = vmatpush1.bf16.msra.mxu0 %v1795_v11  ;;  %v1936_v11 = vpack.c.bf16 %v1067_v9, %v1066_v8  ;;  %v1084_v8 = vld [vmem:[#allocation8 + $0x170] sm:$0xff]  ;;  %v1085_v9 = vld [vmem:[#allocation8 + $0x178] sm:$0xff] }
 0x135   :  { %1798 = vmatprep.subr.bf16.mxu0 %v1797_v13  ;;  %v1050_v13 = vld [vmem:[#allocation8 + $0x60] sm:$0xff] }
 0x136   :  { %v1938_v15 = vpack.c.bf16 %v1051_v14, %v1050_v13  ;;  %v1234_v13 = vld [vmem:[#allocation11] sm:$0xff]  ;;  %v1235_v14 = vld [vmem:[#allocation11 + $0x8] sm:$0xff] }
 0x138   :  { %1800 = vmatpush1.bf16.msra.mxu0 %v1799_v17 }
 0x139   :  { %1802 = vmatprep.subr.bf16.mxu0 %v1801_v18  ;;  %v1068_v18 = vld [vmem:[#allocation8 + $0xf0] sm:$0xff] }
 0x13a   :  { %v1940_v19 = vpack.c.bf16 %v1069_v22, %v1068_v18  ;;  %v1238_v18 = vld [vmem:[#allocation11 + $0x20] sm:$0xff]  ;;  %v1239_v22 = vld [vmem:[#allocation11 + $0x28] sm:$0xff] }
 0x13c   :  { %1804 = vmatpush1.bf16.msra.mxu0 %v1803_v23  ;;  %v1942_v23 = vpack.c.bf16 %v1053_v21, %v1052_v20  ;;  %v1240_v20 = vld [vmem:[#allocation11 + $0x30] sm:$0xff]  ;;  %v1241_v21 = vld [vmem:[#allocation11 + $0x38] sm:$0xff] }
 0x13d   :  { %1806 = vmatprep.subr.bf16.mxu0 %v1805_v24  ;;  %v422_v24 = vsub.s32 2, %v2348_v34  ;;  %v1074_v34 = vld [vmem:[#allocation8 + $0x120] sm:$0xff] }
 0x13e   :  { %v1951_v59 = vpack.c.bf16 %v1075_v58, %v1074_v34 }
 0x13f   :  { %v423_v26 = vrot.slane %v410_v25, %v422_v24  ;;  %v1243_v24 = vld [vmem:[#allocation11 + $0x48] sm:$0xff] }
 0x140   :  { %1808 = vmatpush1.bf16.msra.mxu0 %v1807_v29 }
 0x141   :  { %1810 = vmatprep.subr.bf16.mxu0 %v1809_v30 }
 0x143   :  { %678 = vmatmul.mubr.f32.vlgmr.msra.gmra.mrb[0].mxu0 %v2374_v16  ;;  %v1059_v16 = vld [vmem:[#allocation8 + $0xa8] sm:$0xff] }
 0x144   :  { %1812 = vmatpush1.bf16.msra.mxu0 %v1811_v33  ;;  %748 = vmatprep.mubr.f32.mxu0 %v2222_v62  ;;  %v1920_v51 = vpack.c.bf16 %v1059_v16, %v1058_v48  ;;  %v1070_v16 = vld [vmem:[#allocation8 + $0x100] sm:$0xff] }
 0x146   :  { %1921 = vmatprep.subr.bf16.mxu1 %v1920_v51 }
 0x14b   :  { %1359 = vmatmul.mubr.msk.f32.vlgmr.msra.gmra.mrb[0].mxu0 %vm468_vm1, %v2387_v60  ;;  %v1043_v60 = vld [vmem:[#allocation8 + $0x28] sm:$0xff] }
 0x14c   :  { %v1922_v56 = vpack.c.bf16 %v1043_v60, %v1042_v52  ;;  %v1945_v60 = vpack.c.bf16 %v1071_v49, %v1070_v16 }
 0x14e   :  { %1923 = vmatpush3.bf16.msra.mxu1 %v1922_v56  ;;  %v1073_v56 = vld [vmem:[#allocation8 + $0x118] sm:$0xff] }
 0x14f   :  { %1925 = vmatprep.subr.bf16.mxu1 %v1924_v57  ;;  %v1948_v57 = vpack.c.bf16 %v1073_v56, %v1072_v54 }
 0x152   :  { %1927 = vmatpush3.bf16.msra.mxu1 %v1926_v63  ;;  %v1954_v63 = vpack.c.bf16 %v1077_v12, %v1076_v61 }
 0x153   :  { %1929 = vmatprep.subr.bf16.mxu1 %v1928_v0  ;;  %v1078_v0 = vld [vmem:[#allocation8 + $0x140] sm:$0xff] }
 0x154   :  { %v1957_v2 = vpack.c.bf16 %v1079_v1, %v1078_v0 }
 0x156   :  { %1931 = vmatpush3.bf16.msra.mxu1 %v1930_v4  ;;  %v1960_v4 = vpack.c.bf16 %v1081_v3, %v1080_v42 }
 0x157   :  { %1933 = vmatprep.subr.bf16.mxu1 %v1932_v5  ;;  %v1082_v5 = vld [vmem:[#allocation8 + $0x160] sm:$0xff] }
 0x158   :  { %v1963_v7 = vpack.c.bf16 %v1083_v6, %v1082_v5 }
 0x15a   :  { %1935 = vmatpush3.bf16.msra.mxu1 %v1934_v10  ;;  %v1966_v10 = vpack.c.bf16 %v1085_v9, %v1084_v8 }
 0x15b   :  { %1937 = vmatprep.subr.bf16.mxu1 %v1936_v11 }
 0x15e   :  { %1939 = vmatpush3.bf16.msra.mxu1 %v1938_v15  ;;  %v1236_v15 = vld [vmem:[#allocation11 + $0x10] sm:$0xff] }
 0x15f   :  { %1941 = vmatprep.subr.bf16.mxu1 %v1940_v19  ;;  %v1975_v19 = vpack.c.bf16 %v1239_v22, %v1238_v18 }
 0x162   :  { %1943 = vmatpush3.bf16.msra.mxu1 %v1942_v23  ;;  %v1978_v23 = vpack.c.bf16 %v1241_v21, %v1240_v20 }
 0x163   :  { %1944 = vmatprep.subr.bf16.mxu1 %v2220_v55 }
 0x183   :  { %v1395_v50 = vpop.f32.mrb[0].mxu1 }
 0x184   :  { %v1396_v47 = vpop.f32.mrb[1].mxu1 }
 0x185   :  { %v1397_v17 = vadd.f32 %v1396_v47, %v1395_v50  ;;  %v1969_v50 = vpack.c.bf16 %v1235_v14, %v1234_v13  ;;  %v1237_v47 = vld [vmem:[#allocation11 + $0x18] sm:$0xff] }
 0x187   :  { %v822_v27 = vadd.f32 %v1397_v17, %v423_v26  ;;  %v1972_v17 = vpack.c.bf16 %v1237_v47, %v1236_v15  ;;  %v1244_v26 = vld [vmem:[#allocation11 + $0x50] sm:$0xff] }
 0x1a8   :  { %v1430_v28 = vpop.f32.mrb[2].mxu1 }
 0x1a9   :  { %v1431_v29 = vpop.f32.mrb[3].mxu1 }
 0x1aa   :  { %v1432_v30 = vadd.f32 %v1431_v29, %v1430_v28  ;;  %v1246_v29 = vld [vmem:[#allocation11 + $0x60] sm:$0xff] }
 0x1ac   :  { %v892_v31 = vadd.f32 %v1432_v30, %v822_v27  ;;  %v1245_v27 = vld [vmem:[#allocation11 + $0x58] sm:$0xff]  ;;  %v1247_v30 = vld [vmem:[#allocation11 + $0x68] sm:$0xff] }
 0x1ad   :  { %v1984_v28 = vpack.c.bf16 %v1245_v27, %v1244_v26 }
 0x1c8   :  { %v1465_v32 = vpop.f32.mrb[4].mxu1 }
 0x1c9   :  { %v1466_v33 = vpop.f32.mrb[5].mxu1 }
 0x1ca   :  { %v1467_v35 = vadd.f32 %v1466_v33, %v1465_v32  ;;  %v1248_v32 = vld [vmem:[#allocation11 + $0x70] sm:$0xff]  ;;  %v1249_v33 = vld [vmem:[#allocation11 + $0x78] sm:$0xff] }
 0x1cc   :  { %v962_v36 = vadd.f32 %v1467_v35, %v892_v31  ;;  %v1031_v37 = vpop.f32.mrb[6].mxu1  ;;  %v1987_v31 = vpack.c.bf16 %v1247_v30, %v1246_v29  ;;  %v1990_v35 = vpack.c.bf16 %v1249_v33, %v1248_v32 }
 0x1cd   :  { %v1546_v38 = vpop.f32.mrb[7].mxu1 }
 0x1ce   :  { %v1032_v39 = vadd.f32 %v1031_v37, %v962_v36 }
 0x1d0   :  { %v1037_v11 = vmax.f32 %v1032_v39, 0.0  ;;  %v1361_v39 = vld [vmem:[#allocation10] ss:$0 sm:$0xff] }
 0x21e   :  { %v750_v45 = vpop.f32.mrb[0].mxu0 }
 0x21f   :  { %v1992_v46 = vadd.f32 %v750_v45, %v415_v43  ;;  %v752_v48 = vpop.f32.mrb[1].mxu0 }
 0x220   :  { %v1993_v51 = vadd.f32 %v752_v48, %v419_v44 }
 0x221   :  { %v1035_v53 = vmax.f32 %v1992_v46, 0.0  ;;  %v1362_v46 = vld [vmem:[#allocation13] ss:$0 sm:$0xff] }
 0x222   :  { %v1036_v52 = vmax.f32 %v1993_v51, 0.0 }
 0x224   :  { %1157 = vmatprep.mubr.f32.mxu1 %v1036_v52 }
 0x225   :  { %1158 = vmatmul.mubr.f32.vlgmr.msra.gmra.mrb[8].mxu1 %v1035_v53 }
 0x226   :  { %1946 = vmatpush3.bf16.msra.mxu1 %v1945_v60  ;;  %1579 = vmatprep.mubr.msk.f32.mxu1 %vm2221_vm0, %v2222_v62 }
 0x227   :  { %1947 = vmatprep.subr.bf16.mxu1 %v2220_v55 }
 0x22a   :  { %1949 = vmatpush3.bf16.msra.mxu1 %v1948_v57 }
 0x22b   :  { %1950 = vmatprep.subr.bf16.mxu1 %v2220_v55 }
 0x22e   :  { %1952 = vmatpush3.bf16.msra.mxu1 %v1951_v59 }
 0x22f   :  { %1953 = vmatprep.subr.bf16.mxu1 %v2220_v55 }
 0x232   :  { %1955 = vmatpush3.bf16.msra.mxu1 %v1954_v63 }
 0x233   :  { %1956 = vmatprep.subr.bf16.mxu1 %v2220_v55 }
 0x236   :  { %1958 = vmatpush3.bf16.msra.mxu1 %v1957_v2 }
 0x237   :  { %1959 = vmatprep.subr.bf16.mxu1 %v2220_v55 }
 0x23a   :  { %1961 = vmatpush3.bf16.msra.mxu1 %v1960_v4 }
 0x23b   :  { %1962 = vmatprep.subr.bf16.mxu1 %v2220_v55 }
 0x23e   :  { %1964 = vmatpush3.bf16.msra.mxu1 %v1963_v7 }
 0x23f   :  { %1965 = vmatprep.subr.bf16.mxu1 %v2220_v55 }
 0x242   :  { %1967 = vmatpush3.bf16.msra.mxu1 %v1966_v10 }
 0x243   :  { %1968 = vmatprep.subr.bf16.mxu1 %v2220_v55 }
 0x245   :  { %1580 = vmatmul.mubr.f32.vlgmr.msra.gmra.mrb[10].mxu1 %v1037_v11 }
 0x246   :  { %1614 = vmatprep.mubr.msk.f32.mxu1 %vm2221_vm0, %v2222_v62  ;;  %1970 = vmatpush3.bf16.msra.mxu1 %v1969_v50  ;;  %v1242_v62 = vld [vmem:[#allocation11 + $0x40] sm:$0xff] }
 0x247   :  { %1971 = vmatprep.subr.bf16.mxu1 %v2220_v55  ;;  %v1981_v25 = vpack.c.bf16 %v1243_v24, %v1242_v62 }
 0x24a   :  { %1973 = vmatpush3.bf16.msra.mxu1 %v1972_v17 }
 0x24b   :  { %1974 = vmatprep.subr.bf16.mxu1 %v2220_v55 }
 0x24e   :  { %1976 = vmatpush3.bf16.msra.mxu1 %v1975_v19 }
 0x24f   :  { %1977 = vmatprep.subr.bf16.mxu1 %v2220_v55 }
 0x252   :  { %1979 = vmatpush3.bf16.msra.mxu1 %v1978_v23 }
 0x253   :  { %1980 = vmatprep.subr.bf16.mxu1 %v2220_v55 }
 0x256   :  { %1982 = vmatpush3.bf16.msra.mxu1 %v1981_v25 }
 0x257   :  { %1983 = vmatprep.subr.bf16.mxu1 %v2220_v55 }
 0x25a   :  { %1985 = vmatpush3.bf16.msra.mxu1 %v1984_v28 }
 0x25b   :  { %1986 = vmatprep.subr.bf16.mxu1 %v2220_v55 }
 0x25e   :  { %1988 = vmatpush3.bf16.msra.mxu1 %v1987_v31 }
 0x25f   :  { %1989 = vmatprep.subr.bf16.mxu1 %v2220_v55 }
 0x262   :  { %1991 = vmatpush3.bf16.msra.mxu1 %v1990_v35 }
 0x2f8   :  { %v1503_v36 = vpop.f32.mrb[8].mxu1 }
 0x2f9   :  { %v1504_v37 = vpop.f32.mrb[9].mxu1 }
 0x2fa   :  { %v1505_v38 = vadd.f32 %v1504_v37, %v1503_v36 }
 0x2fc   :  { %v1160_v40 = vadd.f32 %v1505_v38, %v1361_v39 }
 0x318   :  { %v1229_v41 = vpop.f32.mrb[10].mxu1 }
 0x319   :  { %v1230_v43 = vadd.f32 %v1229_v41, %v1160_v40  ;;  %v1581_v44 = vpop.f32.mrb[11].mxu1 }
 0x31b   :  { %v1233_v45 = vmax.f32 %v1230_v43, 0.0 }
 0x31d   :  { %1615 = vmatmul.mubr.f32.vlgmr.msra.gmra.mrb[12].mxu1 %v1233_v45 }
 0x3f0   :  { %v1323_v48 = vpop.f32.mrb[12].mxu1 }
 0x3f1   :  { %v1324_v16 = vadd.f32 %v1362_v46, %v1323_v48  ;;  %v1616_v49 = vpop.f32.mrb[13].mxu1 }
 0x3f3   :  { %v1328_v55 = vsel %vm1327_vm2, %v1324_v16, -inf }
 0x3f4   :  { %1329 = vmax.xlane.f32.xlu0 %v1328_v55 }
 0x481   :  { %v1330_v51 = vpop.xlane.xlu0 %1329 }
 0x482   :  { %v1331_v52 = vsub.f32 %v1324_v16, %v1330_v51 }
 0x484   :  { %v1332_v60 = vmul.f32 1.442695, %v1331_v52 }
 0x486   :  { %2018 = vpow2.f32 %v1332_v60 }
 0x490   :  { %v2019_v53 = vpop.eup %2018 }
 0x491   :  { %v1334_v54 = vsel %vm1327_vm2, %v2019_v53, 0.0 }
 0x492   :  { %1335 = vadd.xlane.f32.xlu0 %v1334_v54 }
 0x51f   :  { %v1336_v56 = vpop.xlane.xlu0 %1335 }
 0x520   :  { %2020 = vlog2.f32 %v1336_v56 }
 0x52a   :  { %v2021_v57 = vpop.eup %2020 }
 0x52b   :  { %v1338_v34 = vmul.f32 0.6931472, %v2021_v57 }
 0x52d   :  { %v1339_v58 = vsub.f32 %v1331_v52, %v1338_v34 }
 0x52f   :  { %1340 = vst [vmem:[#allocation14] sm:$0x3] %v1339_v58 }
 0x530   :  { %2187 = shalt.err (!%p2184_p4)
}
 0x531   :  { %s2188_s3 = scalar_lea.hbm %s2441_s7, 32 }
 0x532   :  { %p2189_p5 = scmp.ne.s32.totalorder %s2441_s7, %s2188_s3  ;;  %p2192_p6 = scmp.lt.u32.totalorder %s2188_s3, %s2441_s7 }
 0x534   :  { %p2194_p7 = pnand %p2192_p6, %p2189_p5 }
 0x536   :  { %2197 = shalt.err (!%p2194_p7)
}
 0x537   :  { %1350 = dma.vmem_to_hbm [thread:$0]  %s1348_s14, 32, %s2441_s7, [#allocation4]  }
 0x538   :  { %2206 = dma.done.wait [#allocation4], 32  }
 0x539   :  { %2207 = vsyncadd [#allocation4], 4294967264 }
 0x53a   :  { %1354 = vsyncpa [#allocation3], 1 }
 0x53b   :  { %1355 = vsyncpa [#allocation6], 1 }
 0x53c   :  { %1356 = vsyncpa [#allocation9], 1 }
 0x53d   :  { %1357 = vsyncpa [#allocation12], 1 }
 0x53e   :  { %1358 = vsyncpa [#allocation4], 1 }

</bundles_post_ra>
